<compile_context>
chip_gen: v6e
topology: v6e:2x2x1
jax: 0.10.0
libtpu: 0.0.40
codegen_flags: <defaults>
</compile_context>

<pallas_src>
import jax
import jax.numpy as jnp
from jax.experimental import pallas as pl
from jax.experimental.pallas import tpu as pltpu

_EPS = 1e-5                       # nn.BatchNorm2d default eps
_VMEM_LIMIT = 48 * 1024 * 1024    # above the 32 MiB scoped default, below v7x 64 MiB physical


# ---------------------------------------------------------------------------
# Pass 1: 3x3 conv as one im2col matmul per (image, row-tile) grid step, plus
# per-tile per-channel sum / sum-of-squares for the BatchNorm batch statistics.
# ---------------------------------------------------------------------------
def _conv_im2col_stats_kernel(x_ref, w_ref, y_ref, ps_ref, xp_ref, patch_ref):
    # x_ref:     (1, H, W, Cin)      whole image (re-DMA'd only when the batch index changes)
    # w_ref:     (Cout, 9*Cin)       im2col weights, (dy, dx, cin) flattened on the K axis
    # y_ref:     (1, 1, Cout, TR*W)  lane-dense conv-output tile (channels on sublanes)
    # ps_ref:    (1, 1, Cout, 2)     per-tile per-channel (sum, sum-of-squares)
    # xp_ref:    (H+2, W+2, Cin)     zero-padded image scratch (refreshed when r == 0)
    # patch_ref: (TR, W, 9*Cin)      im2col slab scratch
    _, H, W, Cin = x_ref.shape
    TR = patch_ref.shape[0]
    r = pl.program_id(1)

    # Build the zero-padded image once per batch element (padding done in-kernel,
    # no extra HBM round trip).  The row axis is "arbitrary", so r == 0 always runs
    # first for each image on each core.
    @pl.when(r == 0)
    def _():
        xp_ref[...] = jnp.zeros_like(xp_ref)
        xp_ref[1:H + 1, 1:W + 1, :] = x_ref[0]

    r0 = r * TR
    # im2col: gather the 9 shifted (TR, W, Cin) slabs once into VMEM scratch.
    for dy in range(3):
        for dx in range(3):
            tap = dy * 3 + dx
            patch_ref[:, :, tap * Cin:(tap + 1) * Cin] = (
                xp_ref[pl.ds(r0 + dy, TR), dx:dx + W, :])

    # Single MXU matmul with K = 9*Cin; operands stay in their input dtype,
    # accumulation in f32.  Output (Cout, TR*W): spatial positions on lanes.
    p2 = patch_ref[...].reshape(TR * W, 9 * Cin)
    acc = jnp.dot(w_ref[...], p2.T, preferred_element_type=jnp.float32)

    # Partial BatchNorm statistics for this tile (finalized outside the kernel).
    ps_ref[0, 0, :, 0:1] = jnp.sum(acc, axis=1, keepdims=True)
    ps_ref[0, 0, :, 1:2] = jnp.sum(acc * acc, axis=1, keepdims=True)

    # Lane-dense (unmasked) store of the conv output tile.
    y_ref[0, 0] = acc.astype(y_ref.dtype)


# ---------------------------------------------------------------------------
# Pass 2: y * scale + shift, ReLU (fully lane-dense elementwise kernel).
# ---------------------------------------------------------------------------
def _bn_relu_kernel(y_ref, sb_ref, o_ref):
    y = y_ref[...].astype(jnp.float32)
    scale = sb_ref[:, 0:1]
    shift = sb_ref[:, 1:2]
    o_ref[...] = jnp.maximum(y * scale + shift, 0.0).astype(o_ref.dtype)


def _pick_row_tile(H, W, Cin, itemsize):
    # Largest row tile (multiple of 8) dividing H whose im2col slab stays small.
    for tr in (64, 32, 16, 8):
        if H % tr == 0 and tr * W * 9 * Cin * itemsize <= (4 << 20):
            return tr
    return H  # tiny / odd H: a single row tile covering the whole height


def _conv_stats(x_nhwc, w2t, TR):
    N, H, W, Cin = x_nhwc.shape
    Cout, K = w2t.shape
    R = H // TR
    TRW = TR * W
    itemsize = jnp.dtype(x_nhwc.dtype).itemsize
    return pl.pallas_call(
        _conv_im2col_stats_kernel,
        out_shape=(
            jax.ShapeDtypeStruct((N, R, Cout, TRW), jnp.float32),   # conv output (lane-dense)
            jax.ShapeDtypeStruct((N, R, Cout, 2), jnp.float32),     # partial (sum, sumsq)
        ),
        grid_spec=pltpu.PrefetchScalarGridSpec(
            num_scalar_prefetch=0,
            grid=(N, R),
            in_specs=[
                pl.BlockSpec((1, H, W, Cin), lambda n, r: (n, 0, 0, 0)),
                pl.BlockSpec((Cout, K), lambda n, r: (0, 0)),
            ],
            out_specs=(
                pl.BlockSpec((1, 1, Cout, TRW), lambda n, r: (n, r, 0, 0)),
                pl.BlockSpec((1, 1, Cout, 2), lambda n, r: (n, r, 0, 0)),
            ),
            scratch_shapes=[
                pltpu.VMEM((H + 2, W + 2, Cin), x_nhwc.dtype),   # zero-padded image
                pltpu.VMEM((TR, W, K), x_nhwc.dtype),            # im2col slab
            ],
        ),
        compiler_params=pltpu.CompilerParams(
            dimension_semantics=("parallel", "arbitrary"),
            vmem_limit_bytes=_VMEM_LIMIT,
        ),
        cost_estimate=pl.CostEstimate(
            flops=2 * N * H * W * K * Cout,
            transcendentals=0,
            bytes_accessed=(N * H * W * Cin * itemsize
                            + Cout * K * itemsize
                            + N * H * W * Cout * 4
                            + N * R * Cout * 2 * 4),
        ),
    )(x_nhwc, w2t)


def _bn_relu(y2, sb, TM):
    rows, L = y2.shape
    return pl.pallas_call(
        _bn_relu_kernel,
        out_shape=jax.ShapeDtypeStruct((rows, L), jnp.float32),
        grid_spec=pltpu.PrefetchScalarGridSpec(
            num_scalar_prefetch=0,
            grid=(pl.cdiv(rows, TM),),
            in_specs=[
                pl.BlockSpec((TM, L), lambda i: (i, 0)),
                pl.BlockSpec((TM, 2), lambda i: (i, 0)),   # consolidated scale/shift operand
            ],
            out_specs=pl.BlockSpec((TM, L), lambda i: (i, 0)),
        ),
        compiler_params=pltpu.CompilerParams(
            dimension_semantics=("parallel",),
            vmem_limit_bytes=_VMEM_LIMIT,
        ),
        cost_estimate=pl.CostEstimate(
            flops=3 * rows * L,
            transcendentals=0,
            bytes_accessed=2 * rows * L * 4 + rows * 2 * 4,
        ),
    )(y2, sb)


@jax.jit
def conv_layer_forward(x_nchw, w_oihw, bias, gamma, beta):
    """Conv2d(3x3, stride 1, pad 1) + BatchNorm2d (training mode) + ReLU.  NCHW in/out."""
    del bias  # cancels exactly under training-mode BatchNorm (batch-mean subtraction)
    N, Cin, H, W = x_nchw.shape
    Cout = w_oihw.shape[0]

    TR = _pick_row_tile(H, W, Cin, jnp.dtype(x_nchw.dtype).itemsize)
    R = H // TR
    TRW = TR * W

    # Interface plumbing: NCHW -> NHWC activations, OIHW -> (Cout, 9*Cin) im2col weights.
    x_nhwc = jnp.transpose(x_nchw, (0, 2, 3, 1))
    w2t = jnp.transpose(w_oihw, (0, 2, 3, 1)).reshape(Cout, 9 * Cin)

    # Pass 1: conv (single im2col matmul per tile) + per-tile channel sums.
    y, ps = _conv_stats(x_nhwc, w2t, TR)

    # Finalize BatchNorm batch statistics (tiny (Cout,)-sized math, biased variance).
    cnt = N * H * W
    tot = jnp.sum(ps, axis=(0, 1))                             # (Cout, 2)
    mean = tot[:, 0] / cnt
    var = jnp.maximum(tot[:, 1] / cnt - mean * mean, 0.0)
    inv = jax.lax.rsqrt(var + _EPS)
    scale_c = gamma * inv
    shift_c = beta - mean * scale_c

    # Pass 2: lane-dense fused scale/shift + ReLU over the (N*R*Cout, TR*W) slab.
    rows = N * R * Cout
    y2 = y.reshape(rows, TRW)
    sb = jnp.stack([jnp.tile(scale_c, N * R), jnp.tile(shift_c, N * R)], axis=1)
    TM = rows if rows <= 512 else 512
    o2 = _bn_relu(y2, sb.astype(jnp.float32), TM)

    # Back to NCHW.
    out = o2.reshape(N, R, Cout, TR, W).transpose(0, 2, 1, 3, 4).reshape(N, Cout, H, W)
    return out.astype(x_nchw.dtype)


def _reference(x_nchw, w_oihw, bias, gamma, beta, eps=_EPS):
    """Pure-JAX reference: Conv2d + train-mode BatchNorm2d + ReLU (includes the bias)."""
    out = jax.lax.conv_general_dilated(
        x_nchw, w_oihw, window_strides=(1, 1), padding=((1, 1), (1, 1)),
        dimension_numbers=("NCHW", "OIHW", "NCHW"))
    out = out + bias.reshape(1, -1, 1, 1)
    mean = out.mean(axis=(0, 2, 3), keepdims=True)
    var = ((out - mean) ** 2).mean(axis=(0, 2, 3), keepdims=True)
    y = (out - mean) * jax.lax.rsqrt(var + eps)
    y = y * gamma.reshape(1, -1, 1, 1) + beta.reshape(1, -1, 1, 1)
    return jnp.maximum(y, 0.0)


if __name__ == "__main__":
    key = jax.random.PRNGKey(0)
    kx, kw, kb = jax.random.split(key, 3)

    N, Cin, Cout, H, W = 2, 4, 8, 16, 16
    x = jax.random.normal(kx, (N, Cin, H, W), jnp.float32)

    # Deterministic parameter init (mirrors PyTorch default shapes/ranges).
    fan_in = Cin * 3 * 3
    bound = 1.0 / (fan_in ** 0.5)
    w = jax.random.uniform(kw, (Cout, Cin, 3, 3), jnp.float32, -bound, bound)
    b = jax.random.uniform(kb, (Cout,), jnp.float32, -bound, bound)
    gamma = jnp.ones((Cout,), jnp.float32)   # BatchNorm2d default weight init
    beta = jnp.zeros((Cout,), jnp.float32)   # BatchNorm2d default bias init

    out = conv_layer_forward(x, w, b, gamma, beta)
    jax.block_until_ready(out)
    assert out.shape == (N, Cout, H, W)

    # Loose gross-error check against a pure-JAX reference (tolerates MXU bf16-pass noise,
    # catches any layout / ordering bug, which would produce O(1) errors post-BN).
    ref = _reference(x, w, b, gamma, beta)
    err = float(jnp.max(jnp.abs(out.astype(jnp.float32) - ref)))
    assert err < 5e-2, f"max abs error vs reference: {err}"

    print("KERNEL_OK")
</pallas_src>

<mosaic_0001>
module attributes {stable_mosaic.version = 11 : i64} {
  func.func @_conv_im2col_stats_kernel(%arg0: i32, %arg1: i32, %arg2: memref<1x16x16x4xf32, #tpu.memory_space<vmem>>, %arg3: memref<8x36xf32, #tpu.memory_space<vmem>>, %arg4: memref<1x1x8x256xf32, #tpu.memory_space<vmem>>, %arg5: memref<1x1x8x2xf32, #tpu.memory_space<vmem>>, %arg6: memref<18x18x4xf32, #tpu.memory_space<vmem>>, %arg7: memref<16x16x36xf32, #tpu.memory_space<vmem>>) attributes {dimension_semantics = [#tpu.dimension_semantics<parallel>, #tpu.dimension_semantics<arbitrary>], iteration_bounds = array<i64: 2, 1>, scalar_prefetch = 0 : i64, scratch_operands = 2 : i64, tpu.core_type = #tpu.core_type<tc>, window_params = [{transform_indices = @transform_0, window_bounds = array<i64: 1, 16, 16, 4>}, {pipeline_mode = #tpu.pipeline_mode<synchronous>, transform_indices = @transform_1, window_bounds = array<i64: 8, 36>}, {transform_indices = @transform_2, window_bounds = array<i64: 1, 1, 8, 256>}, {transform_indices = @transform_3, window_bounds = array<i64: 1, 1, 8, 2>}]} {
    %c0_i32 = arith.constant 0 : i32
    %0 = arith.cmpi eq, %arg1, %c0_i32 : i32
    %1 = arith.extui %0 : i1 to i32
    %c0_i32_0 = arith.constant 0 : i32
    %2 = arith.cmpi ne, %1, %c0_i32_0 : i32
    scf.if %2 {
      %cst_61 = arith.constant 0.000000e+00 : f32
      %59 = vector.broadcast %cst_61 : f32 to vector<18x18x4xf32>
      %c0_62 = arith.constant 0 : index
      %c0_63 = arith.constant 0 : index
      %c0_64 = arith.constant 0 : index
      %60 = vector.load %arg6[%c0_62, %c0_63, %c0_64] : memref<18x18x4xf32, #tpu.memory_space<vmem>>, vector<18x18x4xf32>
      tpu.vector_store %arg6[%c0_62, %c0_63, %c0_64], %59 {strides = array<i32>} : memref<18x18x4xf32, #tpu.memory_space<vmem>>, vector<18x18x4xf32>,
      %c0_65 = arith.constant 0 : index
      %c0_66 = arith.constant 0 : index
      %c0_67 = arith.constant 0 : index
      %c0_68 = arith.constant 0 : index
      %61 = vector.load %arg2[%c0_65, %c0_66, %c0_67, %c0_68] : memref<1x16x16x4xf32, #tpu.memory_space<vmem>>, vector<1x16x16x4xf32>
      %62 = vector.shape_cast %61 : vector<1x16x16x4xf32> to vector<16x16x4xf32>
      %c1_69 = arith.constant 1 : index
      %c1_70 = arith.constant 1 : index
      %c0_71 = arith.constant 0 : index
      %63 = vector.load %arg6[%c1_69, %c1_70, %c0_71] : memref<18x18x4xf32, #tpu.memory_space<vmem>>, vector<16x16x4xf32>
      tpu.vector_store %arg6[%c1_69, %c1_70, %c0_71], %62 {strides = array<i32>} : memref<18x18x4xf32, #tpu.memory_space<vmem>>, vector<16x16x4xf32>,
    } else {
    }
    %c16_i32 = arith.constant 16 : i32
    %3 = arith.muli %arg1, %c16_i32 : i32
    %c0_i32_1 = arith.constant 0 : i32
    %4 = arith.addi %3, %c0_i32_1 : i32
    %5 = arith.index_cast %4 : i32 to index
    %c0 = arith.constant 0 : index
    %c0_2 = arith.constant 0 : index
    %6 = vector.load %arg6[%5, %c0, %c0_2] : memref<18x18x4xf32, #tpu.memory_space<vmem>>, vector<16x16x4xf32>
    %c0_3 = arith.constant 0 : index
    %c0_4 = arith.constant 0 : index
    %c0_5 = arith.constant 0 : index
    %7 = vector.load %arg7[%c0_3, %c0_4, %c0_5] : memref<16x16x36xf32, #tpu.memory_space<vmem>>, vector<16x16x4xf32>
    tpu.vector_store %arg7[%c0_3, %c0_4, %c0_5], %6 {strides = array<i32>} : memref<16x16x36xf32, #tpu.memory_space<vmem>>, vector<16x16x4xf32>,
    %c0_i32_6 = arith.constant 0 : i32
    %8 = arith.addi %3, %c0_i32_6 : i32
    %9 = arith.index_cast %8 : i32 to index
    %c1 = arith.constant 1 : index
    %c0_7 = arith.constant 0 : index
    %10 = vector.load %arg6[%9, %c1, %c0_7] : memref<18x18x4xf32, #tpu.memory_space<vmem>>, vector<16x16x4xf32>
    %c0_8 = arith.constant 0 : index
    %c0_9 = arith.constant 0 : index
    %c4 = arith.constant 4 : index
    %11 = vector.load %arg7[%c0_8, %c0_9, %c4] : memref<16x16x36xf32, #tpu.memory_space<vmem>>, vector<16x16x4xf32>
    tpu.vector_store %arg7[%c0_8, %c0_9, %c4], %10 {strides = array<i32>} : memref<16x16x36xf32, #tpu.memory_space<vmem>>, vector<16x16x4xf32>,
    %c0_i32_10 = arith.constant 0 : i32
    %12 = arith.addi %3, %c0_i32_10 : i32
    %13 = arith.index_cast %12 : i32 to index
    %c2 = arith.constant 2 : index
    %c0_11 = arith.constant 0 : index
    %14 = vector.load %arg6[%13, %c2, %c0_11] : memref<18x18x4xf32, #tpu.memory_space<vmem>>, vector<16x16x4xf32>
    %c0_12 = arith.constant 0 : index
    %c0_13 = arith.constant 0 : index
    %c8 = arith.constant 8 : index
    %15 = vector.load %arg7[%c0_12, %c0_13, %c8] : memref<16x16x36xf32, #tpu.memory_space<vmem>>, vector<16x16x4xf32>
    tpu.vector_store %arg7[%c0_12, %c0_13, %c8], %14 {strides = array<i32>} : memref<16x16x36xf32, #tpu.memory_space<vmem>>, vector<16x16x4xf32>,
    %c1_i32 = arith.constant 1 : i32
    %16 = arith.addi %3, %c1_i32 : i32
    %17 = arith.index_cast %16 : i32 to index
    %c0_14 = arith.constant 0 : index
    %c0_15 = arith.constant 0 : index
    %18 = vector.load %arg6[%17, %c0_14, %c0_15] : memref<18x18x4xf32, #tpu.memory_space<vmem>>, vector<16x16x4xf32>
    %c0_16 = arith.constant 0 : index
    %c0_17 = arith.constant 0 : index
    %c12 = arith.constant 12 : index
    %19 = vector.load %arg7[%c0_16, %c0_17, %c12] : memref<16x16x36xf32, #tpu.memory_space<vmem>>, vector<16x16x4xf32>
    tpu.vector_store %arg7[%c0_16, %c0_17, %c12], %18 {strides = array<i32>} : memref<16x16x36xf32, #tpu.memory_space<vmem>>, vector<16x16x4xf32>,
    %c1_i32_18 = arith.constant 1 : i32
    %20 = arith.addi %3, %c1_i32_18 : i32
    %21 = arith.index_cast %20 : i32 to index
    %c1_19 = arith.constant 1 : index
    %c0_20 = arith.constant 0 : index
    %22 = vector.load %arg6[%21, %c1_19, %c0_20] : memref<18x18x4xf32, #tpu.memory_space<vmem>>, vector<16x16x4xf32>
    %c0_21 = arith.constant 0 : index
    %c0_22 = arith.constant 0 : index
    %c16 = arith.constant 16 : index
    %23 = vector.load %arg7[%c0_21, %c0_22, %c16] : memref<16x16x36xf32, #tpu.memory_space<vmem>>, vector<16x16x4xf32>
    tpu.vector_store %arg7[%c0_21, %c0_22, %c16], %22 {strides = array<i32>} : memref<16x16x36xf32, #tpu.memory_space<vmem>>, vector<16x16x4xf32>,
    %c1_i32_23 = arith.constant 1 : i32
    %24 = arith.addi %3, %c1_i32_23 : i32
    %25 = arith.index_cast %24 : i32 to index
    %c2_24 = arith.constant 2 : index
    %c0_25 = arith.constant 0 : index
    %26 = vector.load %arg6[%25, %c2_24, %c0_25] : memref<18x18x4xf32, #tpu.memory_space<vmem>>, vector<16x16x4xf32>
    %c0_26 = arith.constant 0 : index
    %c0_27 = arith.constant 0 : index
    %c20 = arith.constant 20 : index
    %27 = vector.load %arg7[%c0_26, %c0_27, %c20] : memref<16x16x36xf32, #tpu.memory_space<vmem>>, vector<16x16x4xf32>
    tpu.vector_store %arg7[%c0_26, %c0_27, %c20], %26 {strides = array<i32>} : memref<16x16x36xf32, #tpu.memory_space<vmem>>, vector<16x16x4xf32>,
    %c2_i32 = arith.constant 2 : i32
    %28 = arith.addi %3, %c2_i32 : i32
    %29 = arith.index_cast %28 : i32 to index
    %c0_28 = arith.constant 0 : index
    %c0_29 = arith.constant 0 : index
    %30 = vector.load %arg6[%29, %c0_28, %c0_29] : memref<18x18x4xf32, #tpu.memory_space<vmem>>, vector<16x16x4xf32>
    %c0_30 = arith.constant 0 : index
    %c0_31 = arith.constant 0 : index
    %c24 = arith.constant 24 : index
    %31 = vector.load %arg7[%c0_30, %c0_31, %c24] : memref<16x16x36xf32, #tpu.memory_space<vmem>>, vector<16x16x4xf32>
    tpu.vector_store %arg7[%c0_30, %c0_31, %c24], %30 {strides = array<i32>} : memref<16x16x36xf32, #tpu.memory_space<vmem>>, vector<16x16x4xf32>,
    %c2_i32_32 = arith.constant 2 : i32
    %32 = arith.addi %3, %c2_i32_32 : i32
    %33 = arith.index_cast %32 : i32 to index
    %c1_33 = arith.constant 1 : index
    %c0_34 = arith.constant 0 : index
    %34 = vector.load %arg6[%33, %c1_33, %c0_34] : memref<18x18x4xf32, #tpu.memory_space<vmem>>, vector<16x16x4xf32>
    %c0_35 = arith.constant 0 : index
    %c0_36 = arith.constant 0 : index
    %c28 = arith.constant 28 : index
    %35 = vector.load %arg7[%c0_35, %c0_36, %c28] : memref<16x16x36xf32, #tpu.memory_space<vmem>>, vector<16x16x4xf32>
    tpu.vector_store %arg7[%c0_35, %c0_36, %c28], %34 {strides = array<i32>} : memref<16x16x36xf32, #tpu.memory_space<vmem>>, vector<16x16x4xf32>,
    %c2_i32_37 = arith.constant 2 : i32
    %36 = arith.addi %3, %c2_i32_37 : i32
    %37 = arith.index_cast %36 : i32 to index
    %c2_38 = arith.constant 2 : index
    %c0_39 = arith.constant 0 : index
    %38 = vector.load %arg6[%37, %c2_38, %c0_39] : memref<18x18x4xf32, #tpu.memory_space<vmem>>, vector<16x16x4xf32>
    %c0_40 = arith.constant 0 : index
    %c0_41 = arith.constant 0 : index
    %c32 = arith.constant 32 : index
    %39 = vector.load %arg7[%c0_40, %c0_41, %c32] : memref<16x16x36xf32, #tpu.memory_space<vmem>>, vector<16x16x4xf32>
    tpu.vector_store %arg7[%c0_40, %c0_41, %c32], %38 {strides = array<i32>} : memref<16x16x36xf32, #tpu.memory_space<vmem>>, vector<16x16x4xf32>,
    %c0_42 = arith.constant 0 : index
    %c0_43 = arith.constant 0 : index
    %c0_44 = arith.constant 0 : index
    %40 = vector.load %arg7[%c0_42, %c0_43, %c0_44] : memref<16x16x36xf32, #tpu.memory_space<vmem>>, vector<16x16x36xf32>
    %41 = vector.shape_cast %40 : vector<16x16x36xf32> to vector<256x36xf32>
    %c0_45 = arith.constant 0 : index
    %c0_46 = arith.constant 0 : index
    %42 = vector.load %arg3[%c0_45, %c0_46] : memref<8x36xf32, #tpu.memory_space<vmem>>, vector<8x36xf32>
    %43 = tpu.transpose %41, [1, 0] : vector<256x36xf32> -> vector<36x256xf32>
    %cst = arith.constant dense<0.000000e+00> : vector<8x256xf32>
    %44 = tpu.matmul %42, %43, %cst {dimension_numbers = #tpu.dot_dimension_numbers<[1], [0], [0], [1], [0, 0, 1, 1], [], []>} : vector<8x36xf32>, vector<36x256xf32>, vector<8x256xf32> -> vector<8x256xf32>
    %cst_47 = arith.constant dense<0.000000e+00> : vector<8xf32>
    %45 = vector.multi_reduction <add>, %44, %cst_47 [1] : vector<8x256xf32> to vector<8xf32>
    %46 = vector.shape_cast %45 : vector<8xf32> to vector<8x1xf32>
    %c0_48 = arith.constant 0 : index
    %c0_49 = arith.constant 0 : index
    %c0_50 = arith.constant 0 : index
    %c0_51 = arith.constant 0 : index
    %47 = vector.load %arg5[%c0_48, %c0_49, %c0_50, %c0_51] : memref<1x1x8x2xf32, #tpu.memory_space<vmem>>, vector<1x1x8x1xf32>
    %48 = vector.shape_cast %47 : vector<1x1x8x1xf32> to vector<8x1xf32>
    %49 = vector.shape_cast %46 : vector<8x1xf32> to vector<1x1x8x1xf32>
    tpu.vector_store %arg5[%c0_48, %c0_49, %c0_50, %c0_51], %49 {strides = array<i32>} : memref<1x1x8x2xf32, #tpu.memory_space<vmem>>, vector<1x1x8x1xf32>,
    %50 = arith.mulf %44, %44 : vector<8x256xf32>
    %cst_52 = arith.constant dense<0.000000e+00> : vector<8xf32>
    %51 = vector.multi_reduction <add>, %50, %cst_52 [1] : vector<8x256xf32> to vector<8xf32>
    %52 = vector.shape_cast %51 : vector<8xf32> to vector<8x1xf32>
    %c0_53 = arith.constant 0 : index
    %c0_54 = arith.constant 0 : index
    %c0_55 = arith.constant 0 : index
    %c1_56 = arith.constant 1 : index
    %53 = vector.load %arg5[%c0_53, %c0_54, %c0_55, %c1_56] : memref<1x1x8x2xf32, #tpu.memory_space<vmem>>, vector<1x1x8x1xf32>
    %54 = vector.shape_cast %53 : vector<1x1x8x1xf32> to vector<8x1xf32>
    %55 = vector.shape_cast %52 : vector<8x1xf32> to vector<1x1x8x1xf32>
    tpu.vector_store %arg5[%c0_53, %c0_54, %c0_55, %c1_56], %55 {strides = array<i32>} : memref<1x1x8x2xf32, #tpu.memory_space<vmem>>, vector<1x1x8x1xf32>,
    %c0_57 = arith.constant 0 : index
    %c0_58 = arith.constant 0 : index
    %c0_59 = arith.constant 0 : index
    %c0_60 = arith.constant 0 : index
    %56 = vector.load %arg4[%c0_57, %c0_58, %c0_59, %c0_60] : memref<1x1x8x256xf32, #tpu.memory_space<vmem>>, vector<1x1x8x256xf32>
    %57 = vector.shape_cast %56 : vector<1x1x8x256xf32> to vector<8x256xf32>
    %58 = vector.shape_cast %44 : vector<8x256xf32> to vector<1x1x8x256xf32>
    tpu.vector_store %arg4[%c0_57, %c0_58, %c0_59, %c0_60], %58 {strides = array<i32>} : memref<1x1x8x256xf32, #tpu.memory_space<vmem>>, vector<1x1x8x256xf32>,
    return
  }
  func.func @transform_0(%arg0: i32, %arg1: i32) -> (i32, i32, i32, i32) {
    %c0_i32 = arith.constant 0 : i32
    %c0_i32_0 = arith.constant 0 : i32
    %c0_i32_1 = arith.constant 0 : i32
    %c0_i32_2 = arith.constant 0 : i32
    return %arg0, %c0_i32, %c0_i32_0, %c0_i32_1 : i32, i32, i32, i32
  }
  func.func @transform_1(%arg0: i32, %arg1: i32) -> (i32, i32) {
    %c0_i32 = arith.constant 0 : i32
    %c0_i32_0 = arith.constant 0 : i32
    %c0_i32_1 = arith.constant 0 : i32
    return %c0_i32, %c0_i32_0 : i32, i32
  }
  func.func @transform_2(%arg0: i32, %arg1: i32) -> (i32, i32, i32, i32) {
    %c0_i32 = arith.constant 0 : i32
    %c0_i32_0 = arith.constant 0 : i32
    %c0_i32_1 = arith.constant 0 : i32
    return %arg0, %arg1, %c0_i32, %c0_i32_0 : i32, i32, i32, i32
  }
  func.func @transform_3(%arg0: i32, %arg1: i32) -> (i32, i32, i32, i32) {
    %c0_i32 = arith.constant 0 : i32
    %c0_i32_0 = arith.constant 0 : i32
    %c0_i32_1 = arith.constant 0 : i32
    return %arg0, %arg1, %c0_i32, %c0_i32_0 : i32, i32, i32, i32
  }
}

module attributes {stable_mosaic.version = 11 : i64} {
  func.func @_bn_relu_kernel(%arg0: i32, %arg1: memref<16x256xf32, #tpu.memory_space<vmem>>, %arg2: memref<16x2xf32, #tpu.memory_space<vmem>>, %arg3: memref<16x256xf32, #tpu.memory_space<vmem>>) attributes {dimension_semantics = [#tpu.dimension_semantics<parallel>], iteration_bounds = array<i64: 1>, scalar_prefetch = 0 : i64, scratch_operands = 0 : i64, tpu.core_type = #tpu.core_type<tc>, window_params = [{transform_indices = @transform_0, window_bounds = array<i64: 16, 256>}, {transform_indices = @transform_1, window_bounds = array<i64: 16, 2>}, {transform_indices = @transform_2, window_bounds = array<i64: 16, 256>}]} {
    %c0 = arith.constant 0 : index
    %c0_0 = arith.constant 0 : index
    %0 = vector.load %arg1[%c0, %c0_0] : memref<16x256xf32, #tpu.memory_space<vmem>>, vector<16x256xf32>
    %c0_1 = arith.constant 0 : index
    %c0_2 = arith.constant 0 : index
    %1 = vector.load %arg2[%c0_1, %c0_2] : memref<16x2xf32, #tpu.memory_space<vmem>>, vector<16x1xf32>
    %c0_3 = arith.constant 0 : index
    %c1 = arith.constant 1 : index
    %2 = vector.load %arg2[%c0_3, %c1] : memref<16x2xf32, #tpu.memory_space<vmem>>, vector<16x1xf32>
    %3 = vector.broadcast %1 : vector<16x1xf32> to vector<16x256xf32>
    %4 = arith.mulf %0, %3 : vector<16x256xf32>
    %5 = vector.broadcast %2 : vector<16x1xf32> to vector<16x256xf32>
    %6 = arith.addf %4, %5 : vector<16x256xf32>
    %cst = arith.constant 0.000000e+00 : f32
    %7 = vector.broadcast %cst : f32 to vector<16x256xf32>
    %8 = arith.maximumf %6, %7 : vector<16x256xf32>
    %c0_4 = arith.constant 0 : index
    %c0_5 = arith.constant 0 : index
    %9 = vector.load %arg3[%c0_4, %c0_5] : memref<16x256xf32, #tpu.memory_space<vmem>>, vector<16x256xf32>
    tpu.vector_store %arg3[%c0_4, %c0_5], %8 {strides = array<i32>} : memref<16x256xf32, #tpu.memory_space<vmem>>, vector<16x256xf32>,
    return
  }
  func.func @transform_0(%arg0: i32) -> (i32, i32) {
    %c0_i32 = arith.constant 0 : i32
    %c0_i32_0 = arith.constant 0 : i32
    return %arg0, %c0_i32 : i32, i32
  }
  func.func @transform_1(%arg0: i32) -> (i32, i32) {
    %c0_i32 = arith.constant 0 : i32
    %c0_i32_0 = arith.constant 0 : i32
    return %arg0, %c0_i32 : i32, i32
  }
  func.func @transform_2(%arg0: i32) -> (i32, i32) {
    %c0_i32 = arith.constant 0 : i32
    %c0_i32_0 = arith.constant 0 : i32
    return %arg0, %c0_i32 : i32, i32
  }
}

</mosaic_0001>

<bundles_post_ra>
// kernel: tile.19
= control target key start
LH: loop header
LB: loop body
LE: loop exit
PB: predicated region body
PF: predicated region fallthrough
CT: control target
= control target key end

     0   :  { %vm8_vm0 = vcmask 64512   ;;  %vm14_vm1 = vcmask 130112   ;;  %s42_s0 = inlined_call_operand.vmem [shape: f32[2,8], index: 0, kind: input, shape index: {}]   ;;  %s43_s1 = inlined_call_operand.vmem [shape: f32[16,1], index: 1, kind: output, shape index: {}]  }
   0x1   :  { %v5_v0 = vld [vmem:[%s42_s0] sm:$0x3]  ;;  %s25_s0 = smov 8  }
   0x2   :  { %6 = vst [vmem:[#allocation1] sm:$0x3] %v5_v0 }
   0x9   :  { %v11_v1 = vld [vmem:[#allocation1 + $0x1] sm:$0x1]   ;;  %v7_v2 = vld [vmem:[#allocation1] sm:$0x1]  }
   0xa   :  { %12 = vrot.lane.b32.xlu0 %v11_v1, %s25_s0  ;;  %9 = vst.msk [vmem:[#allocation0] sm:$0x1] %vm8_vm0, %v7_v2  }
  0x7c   :  { %v13_v3 = vpop.permute.xlu0 %12  }
  0x7d   :  { %15 = vst.msk [vmem:[#allocation0] sm:$0x1] %vm14_vm1, %v13_v3  }
  0x84   :  { %v20_v4 = vld [vmem:[#allocation0] sm:$0x1] }
  0x85   :  { %23 = vst [vmem:[%s43_s1] sm:$0x1] %v20_v4 }

// kernel: tile.17
= control target key start
LH: loop header
LB: loop body
LE: loop exit
PB: predicated region body
PF: predicated region fallthrough
CT: control target
= control target key end

     0   :  { %s22_s0 = inlined_call_operand.vmem [shape: f32[8], index: 0, kind: input, shape index: {}]   ;;  %s23_s1 = inlined_call_operand.vmem [shape: f32[2,8], index: 1, kind: output, shape index: {}]  }
   0x1   :  { %v4_v0 = vld [vmem:[%s22_s0] ss:$0 sm:$0xff] }
   0x2   :  { %5 = vst [vmem:[%s23_s1] sm:$0x3] %v4_v0 }

// kernel: conv_layer_forward.3
= control target key start
LH: loop header
LB: loop body
LE: loop exit
PB: predicated region body
PF: predicated region fallthrough
CT: control target
= control target key end

     0   :  { %v60_v0 = vmov 1   ;;  %v61_v1 = vmov 0   ;;  %s107_s1 = inlined_call_operand.vmem [shape: f32[16,2], index: 1, kind: input, shape index: {}]   ;;  %s108_s0 = inlined_call_operand.vmem [shape: f32[16,256], index: 0, kind: input, shape index: {}]   ;;  %s109_s2 = inlined_call_operand.vmem [shape: f32[16,256], index: 2, kind: output, shape index: {}]  }
   0x1   :  { %58 = vset.pattern.permute.xlu1 %v60_v0  ;;  %57 = vset.pattern.permute.xlu0 %v61_v1  ;;  %v15_v2 = vld [vmem:[%s107_s1] sm:$0xff]  ;;  %v16_v3 = vld [vmem:[%s107_s1 + $0x8] sm:$0xff]  ;;  %v13_v10 = vld [vmem:[%s108_s0 + $0x10] sm:$0xff] }
   0x2   :  { %32 = vperm.xlu1 %58, %v15_v2   ;;  %19 = vperm.xlu0 %57, %v15_v2   ;;  %v11_v4 = vld [vmem:[%s108_s0] sm:$0xff]  ;;  %v12_v5 = vld [vmem:[%s108_s0 + $0x8] sm:$0xff]  ;;  %v14_v11 = vld [vmem:[%s108_s0 + $0x18] sm:$0xff] }
   0x6   :  { %36 = vperm.xlu1 %58, %v16_v3   ;;  %24 = vperm.xlu0 %57, %v16_v3  }
   0xa   :  { %59 = vset.pattern.permute.xlu0 %v60_v0 }
  0x7d   :  { %v33_v6 = vpop.permute.xlu1 %32  ;;  %v20_v7 = vpop.permute.xlu0 %19 }
  0x7e   :  { %v27_v8 = vmul.f32 %v20_v7, %v11_v4  ;;  %v28_v9 = vmul.f32 %v20_v7, %v12_v5 }
  0x80   :  { %v39_v12 = vadd.f32 %v33_v6, %v27_v8  ;;  %v40_v13 = vadd.f32 %v33_v6, %v28_v9 }
  0x81   :  { %v25_v14 = vpop.permute.xlu0 %24  ;;  %v37_v19 = vpop.permute.xlu1 %36 }
  0x82   :  { %v43_v15 = vmax.f32 %v39_v12, 0.0  ;;  %v44_v16 = vmax.f32 %v40_v13, 0.0  ;;  %v29_v17 = vmul.f32 %v25_v14, %v13_v10  ;;  %v30_v18 = vmul.f32 %v25_v14, %v14_v11 }
  0x84   :  { %47 = vst [vmem:[%s109_s2] sm:$0xff] %v43_v15  ;;  %48 = vst [vmem:[%s109_s2 + $0x8] sm:$0xff] %v44_v16  ;;  %v41_v20 = vadd.f32 %v37_v19, %v29_v17  ;;  %v42_v21 = vadd.f32 %v37_v19, %v30_v18 }
  0x86   :  { %v45_v22 = vmax.f32 %v41_v20, 0.0  ;;  %v46_v23 = vmax.f32 %v42_v21, 0.0 }
  0x88   :  { %49 = vst [vmem:[%s109_s2 + $0x10] sm:$0xff] %v45_v22  ;;  %50 = vst [vmem:[%s109_s2 + $0x18] sm:$0xff] %v46_v23 }

// kernel: conv_layer_forward.2
= control target key start
LH: loop header
LB: loop body
LE: loop exit
PB: predicated region body
PF: predicated region fallthrough
CT: control target
= control target key end

     0   :  { %s2666_s12 = smov 0   ;;  %s2668_s13 = smov 0   ;;  %s3807_s0 = inlined_call_operand.vmem [shape: f32[2,16,16,4], index: 0, kind: input, shape index: {}]   ;;  %s3808_s1 = inlined_call_operand.vmem [shape: f32[8,36], index: 1, kind: input, shape index: {}]   ;;  %s3809_s2 = inlined_call_operand.vmem [shape: f32[2,1,8,256], index: 2, kind: output, shape index: {0}]   ;;  %s3810_s3 = inlined_call_operand.vmem [shape: f32[2,1,8,2], index: 3, kind: output, shape index: {1}]  }
   0x1   :  { %s2670_s14 = smov 0  }
   0x2 LB: > { %s26_s15 = sadd.s32 1, %s2631_s13  ;;  %p2311_p0 = scmp.ge.s32.totalorder %s2635_s14, 1  ;;  %s2635_s14 = sphi %s2670_s14, %s14_s14   ;;  %s2631_s13 = sphi %s2668_s13, %s3812_s13   ;;  %s2627_s12 = sphi %s2666_s12, %s3811_s12  }
   0x3   : > { %p28_p1 = scmp.ge.s32.totalorder %s26_s15, 2  ;;  %p156_p2 = scmp.lt.s32.totalorder %s2635_s14, 3 }
   0x5   : > { %s3814_s15 = smov (%p28_p1, %s26_s15), 0  ;;  %p157_p3 = pnand %p2311_p0, %p156_p2 }
   0x6   : > { %p191_p4 = scmp.lt.s32.totalorder (!%p157_p3), %s2627_s12, 1  ;;  %s2638_s20 = smov (!%p157_p3), 4  }
   0x7   : > { %160 = sbr.rel (%p157_p3) target bundleno = 1020 (0x3fc), region = 28  ;;  %s2639_s21 = smov (!%p157_p3), 8  }
   0x8   : > { %s2640_s22 = smov (!%p157_p3), 12   ;;  %s2641_s23 = smov (!%p157_p3), 16  }
   0x9   : > { %s2642_s24 = smov (!%p157_p3), 20   ;;  %s2643_s25 = smov (!%p157_p3), 24  }
   0xa   : > { %s2644_s26 = smov (!%p157_p3), 28   ;;  %s2645_s27 = smov (!%p157_p3), 32  }
   0xc   : > { %vm216_vm0 = vcmask 31744   ;;  %vm219_vm1 = vcmask 25600   ;;  %v2637_v0 = vmov 0.0   ;;  %s3816_s12 = smov (!%p191_p4, %s2627_s12), 1  ;;  %vm565_vm2 = vcmask 64544  }
   0xd   : > { %217 = vst.msk [vmem:[#allocation2] sm:$0xff] %vm216_vm0, %v2637_v0  ;;  %218 = vst.msk [vmem:[#allocation2 + $0x8] sm:$0xff] %vm216_vm0, %v2637_v0  ;;  %s2544_s16 = sshll.u32 %s3816_s12, 8  ;;  %vm758_vm3 = vcmask 97344   ;;  %vm954_vm4 = vcmask 130144   ;;  %vm1147_vm5 = vcmask 162944  }
   0xe   : > { %221 = vst.msk [vmem:[#allocation2 + $0x18] sm:$0xff] %vm216_vm0, %v2637_v0  ;;  %222 = vst.msk [vmem:[#allocation2 + $0x20] sm:$0xff] %vm216_vm0, %v2637_v0  ;;  %s2750_s19 = scalar_lea.vmem %s3807_s0, %s2544_s16  ;;  %vm1340_vm6 = vcmask 195744   ;;  %vm1536_vm7 = vcmask 228544   ;;  %vm1729_vm8 = vcmask 261344   ;;  %vm1922_vm9 = vcmask 294144  }
   0xf   : > { %224 = vst.msk [vmem:[#allocation2 + $0x30] sm:$0xff] %vm216_vm0, %v2637_v0  ;;  %225 = vst.msk [vmem:[#allocation2 + $0x38] sm:$0xff] %vm216_vm0, %v2637_v0  ;;  %v272_v1 = vld [vmem:[%s2750_s19] sm:$0xff]  ;;  %v273_v2 = vld [vmem:[%s2750_s19 + $0x8] sm:$0xff]  ;;  %vm1988_vm10 = vcmask 293888   ;;  %s2545_s30 = sshll.u32 %s3816_s12, 4 }
  0x10   : > { %227 = vst.msk [vmem:[#allocation2 + $0x48] sm:$0xff] %vm216_vm0, %v2637_v0  ;;  %228 = vst.msk [vmem:[#allocation2 + $0x50] sm:$0xff] %vm216_vm0, %v2637_v0  ;;  %v274_v3 = vld [vmem:[%s2750_s19 + $0x10] sm:$0xff]  ;;  %v275_v4 = vld [vmem:[%s2750_s19 + $0x18] sm:$0xff]  ;;  %s204_s6 = scalar_lea.vmem %s3809_s2, %s2545_s30  ;;  %s2316_s7 = sshll.u32 %s3816_s12, 3  ;;  %vm2162_vm11 = vcmask 7168  }
  0x11   : > { %230 = vst.msk [vmem:[#allocation2 + $0x60] sm:$0xff] %vm216_vm0, %v2637_v0  ;;  %231 = vst.msk [vmem:[#allocation2 + $0x68] sm:$0xff] %vm216_vm0, %v2637_v0  ;;  %v276_v5 = vld [vmem:[%s2750_s19 + $0x20] sm:$0xff]  ;;  %v277_v6 = vld [vmem:[%s2750_s19 + $0x28] sm:$0xff]  ;;  %s211_s10 = scalar_lea.vmem %s3810_s3, %s2316_s7  ;;  %vm2169_vm12 = vcmask 15368  }
  0x12   : > { %233 = vst.msk [vmem:[#allocation2 + $0x78] sm:$0xff] %vm216_vm0, %v2637_v0  ;;  %234 = vst.msk [vmem:[#allocation2 + $0x80] sm:$0xff] %vm216_vm0, %v2637_v0  ;;  %v278_v9 = vld [vmem:[%s2750_s19 + $0x30] sm:$0xff]  ;;  %v279_v10 = vld [vmem:[%s2750_s19 + $0x38] sm:$0xff] }
  0x13   : > { %236 = vst.msk [vmem:[#allocation2 + $0x90] sm:$0xff] %vm216_vm0, %v2637_v0  ;;  %237 = vst.msk [vmem:[#allocation2 + $0x98] sm:$0xff] %vm216_vm0, %v2637_v0  ;;  %v280_v11 = vld [vmem:[%s2750_s19 + $0x40] sm:$0xff]  ;;  %v281_v12 = vld [vmem:[%s2750_s19 + $0x48] sm:$0xff] }
  0x14   : > { %239 = vst.msk [vmem:[#allocation2 + $0xa8] sm:$0xff] %vm216_vm0, %v2637_v0  ;;  %240 = vst.msk [vmem:[#allocation2 + $0xb0] sm:$0xff] %vm216_vm0, %v2637_v0  ;;  %v405_v7 = vld [vmem:[#allocation2 + $0x1] sm:$0xff]  ;;  %v282_v13 = vld [vmem:[%s2750_s19 + $0x50] sm:$0xff] }
  0x15   : > { %242 = vst.msk [vmem:[#allocation2 + $0xc0] sm:$0xff] %vm216_vm0, %v2637_v0  ;;  %243 = vst.msk [vmem:[#allocation2 + $0xc8] sm:$0xff] %vm216_vm0, %v2637_v0  ;;  %469 = vrot.lane.b32.xlu0 %v405_v7, %s2638_s20  ;;  %v283_v14 = vld [vmem:[%s2750_s19 + $0x58] sm:$0xff]  ;;  %v284_v15 = vld [vmem:[%s2750_s19 + $0x60] sm:$0xff] }
  0x16   : > { %245 = vst.msk [vmem:[#allocation2 + $0xd8] sm:$0xff] %vm216_vm0, %v2637_v0  ;;  %246 = vst.msk [vmem:[#allocation2 + $0xe0] sm:$0xff] %vm216_vm0, %v2637_v0  ;;  %v285_v16 = vld [vmem:[%s2750_s19 + $0x68] sm:$0xff]  ;;  %v286_v17 = vld [vmem:[%s2750_s19 + $0x70] sm:$0xff] }
  0x17   : > { %248 = vst.msk [vmem:[#allocation2 + $0xf0] sm:$0xff] %vm216_vm0, %v2637_v0  ;;  %249 = vst.msk [vmem:[#allocation2 + $0xf8] sm:$0xff] %vm216_vm0, %v2637_v0  ;;  %v287_v18 = vld [vmem:[%s2750_s19 + $0x78] sm:$0xff]  ;;  %v288_v19 = vld [vmem:[%s2750_s19 + $0x80] sm:$0xff] }
  0x18   : > { %251 = vst.msk [vmem:[#allocation2 + $0x108] sm:$0xff] %vm216_vm0, %v2637_v0  ;;  %252 = vst.msk [vmem:[#allocation2 + $0x110] sm:$0xff] %vm216_vm0, %v2637_v0  ;;  %v289_v20 = vld [vmem:[%s2750_s19 + $0x88] sm:$0xff]  ;;  %v290_v21 = vld [vmem:[%s2750_s19 + $0x90] sm:$0xff] }
  0x19   : > { %254 = vst.msk [vmem:[#allocation2 + $0x120] sm:$0xff] %vm216_vm0, %v2637_v0  ;;  %255 = vst.msk [vmem:[#allocation2 + $0x128] sm:$0xff] %vm216_vm0, %v2637_v0  ;;  %v291_v22 = vld [vmem:[%s2750_s19 + $0x98] sm:$0xff]  ;;  %v292_v23 = vld [vmem:[%s2750_s19 + $0xa0] sm:$0xff] }
  0x1a   : > { %257 = vst.msk [vmem:[#allocation2 + $0x138] sm:$0xff] %vm216_vm0, %v2637_v0  ;;  %258 = vst.msk [vmem:[#allocation2 + $0x140] sm:$0xff] %vm216_vm0, %v2637_v0  ;;  %v293_v24 = vld [vmem:[%s2750_s19 + $0xa8] sm:$0xff]  ;;  %v294_v28 = vld [vmem:[%s2750_s19 + $0xb0] sm:$0xff] }
  0x1b   : > { %260 = vst.msk [vmem:[#allocation2 + $0x150] sm:$0xff] %vm216_vm0, %v2637_v0  ;;  %261 = vst.msk [vmem:[#allocation2 + $0x158] sm:$0xff] %vm216_vm0, %v2637_v0  ;;  %v295_v29 = vld [vmem:[%s2750_s19 + $0xb8] sm:$0xff]  ;;  %v296_v33 = vld [vmem:[%s2750_s19 + $0xc0] sm:$0xff] }
  0x1c   : > { %263 = vst.msk [vmem:[#allocation2 + $0x168] sm:$0xff] %vm216_vm0, %v2637_v0  ;;  %264 = vst.msk [vmem:[#allocation2 + $0x170] sm:$0xff] %vm216_vm0, %v2637_v0  ;;  %v297_v34 = vld [vmem:[%s2750_s19 + $0xc8] sm:$0xff]  ;;  %v298_v35 = vld [vmem:[%s2750_s19 + $0xd0] sm:$0xff] }
  0x1d   : > { %266 = vst.msk [vmem:[#allocation2 + $0x180] sm:$0xff] %vm216_vm0, %v2637_v0  ;;  %267 = vst.msk [vmem:[#allocation2 + $0x188] sm:$0xff] %vm216_vm0, %v2637_v0  ;;  %v299_v36 = vld [vmem:[%s2750_s19 + $0xd8] sm:$0xff]  ;;  %v300_v37 = vld [vmem:[%s2750_s19 + $0xe0] sm:$0xff] }
  0x1e   : > { %269 = vst.msk [vmem:[#allocation2 + $0x198] sm:$0xff] %vm216_vm0, %v2637_v0  ;;  %270 = vst.msk [vmem:[#allocation2 + $0x1a0] sm:$0xff] %vm216_vm0, %v2637_v0  ;;  %v301_v38 = vld [vmem:[%s2750_s19 + $0xe8] sm:$0xff]  ;;  %v340_v45 = vld [vmem:[#allocation2] sm:$0xff] }
  0x1f   : > { %220 = vst.msk [vmem:[#allocation2 + $0x10] sm:$0x3] %vm219_vm1, %v2637_v0  ;;  %223 = vst.msk [vmem:[#allocation2 + $0x28] sm:$0x3] %vm219_vm1, %v2637_v0  ;;  %v341_v48 = vld [vmem:[#allocation2 + $0x8] sm:$0xff]  ;;  %v302_v57 = vld [vmem:[%s2750_s19 + $0xf0] sm:$0xff] }
  0x20   : > { %226 = vst.msk [vmem:[#allocation2 + $0x40] sm:$0x3] %vm219_vm1, %v2637_v0  ;;  %229 = vst.msk [vmem:[#allocation2 + $0x58] sm:$0x3] %vm219_vm1, %v2637_v0  ;;  %v303_v58 = vld [vmem:[%s2750_s19 + $0xf8] sm:$0xff] }
  0x21   : > { %232 = vst.msk [vmem:[#allocation2 + $0x70] sm:$0x3] %vm219_vm1, %v2637_v0  ;;  %235 = vst.msk [vmem:[#allocation2 + $0x88] sm:$0x3] %vm219_vm1, %v2637_v0 }
  0x22   : > { %238 = vst.msk [vmem:[#allocation2 + $0xa0] sm:$0x3] %vm219_vm1, %v2637_v0  ;;  %241 = vst.msk [vmem:[#allocation2 + $0xb8] sm:$0x3] %vm219_vm1, %v2637_v0 }
  0x23   : > { %244 = vst.msk [vmem:[#allocation2 + $0xd0] sm:$0x3] %vm219_vm1, %v2637_v0  ;;  %247 = vst.msk [vmem:[#allocation2 + $0xe8] sm:$0x3] %vm219_vm1, %v2637_v0 }
  0x24   : > { %250 = vst.msk [vmem:[#allocation2 + $0x100] sm:$0x3] %vm219_vm1, %v2637_v0  ;;  %253 = vst.msk [vmem:[#allocation2 + $0x118] sm:$0x3] %vm219_vm1, %v2637_v0 }
  0x25   : > { %256 = vst.msk [vmem:[#allocation2 + $0x130] sm:$0x3] %vm219_vm1, %v2637_v0  ;;  %259 = vst.msk [vmem:[#allocation2 + $0x148] sm:$0x3] %vm219_vm1, %v2637_v0 }
  0x26   : > { %262 = vst.msk [vmem:[#allocation2 + $0x160] sm:$0x3] %vm219_vm1, %v2637_v0  ;;  %265 = vst.msk [vmem:[#allocation2 + $0x178] sm:$0x3] %vm219_vm1, %v2637_v0  ;;  %v406_v8 = vld [vmem:[#allocation2 + $0x9] sm:$0xff] }
  0x27   : > { %268 = vst.msk [vmem:[#allocation2 + $0x190] sm:$0x3] %vm219_vm1, %v2637_v0  ;;  %271 = vst.msk [vmem:[#allocation2 + $0x1a8] sm:$0x3] %vm219_vm1, %v2637_v0  ;;  %471 = vrot.lane.b32.xlu0 %v406_v8, %s2638_s20 }
  0x28   : > { %305 = vst.msk [vmem:[#allocation2 + $0x19] sm:$0xff] %vm216_vm0, %v272_v1  ;;  %306 = vst.msk [vmem:[#allocation2 + $0x21] sm:$0xff] %vm216_vm0, %v273_v2 }
  0x29   : > { %307 = vst.msk [vmem:[#allocation2 + $0x31] sm:$0xff] %vm216_vm0, %v274_v3  ;;  %308 = vst.msk [vmem:[#allocation2 + $0x39] sm:$0xff] %vm216_vm0, %v275_v4 }
  0x2a   : > { %309 = vst.msk [vmem:[#allocation2 + $0x49] sm:$0xff] %vm216_vm0, %v276_v5  ;;  %310 = vst.msk [vmem:[#allocation2 + $0x51] sm:$0xff] %vm216_vm0, %v277_v6 }
  0x2b   : > { %311 = vst.msk [vmem:[#allocation2 + $0x61] sm:$0xff] %vm216_vm0, %v278_v9  ;;  %312 = vst.msk [vmem:[#allocation2 + $0x69] sm:$0xff] %vm216_vm0, %v279_v10 }
  0x2c   : > { %313 = vst.msk [vmem:[#allocation2 + $0x79] sm:$0xff] %vm216_vm0, %v280_v11  ;;  %314 = vst.msk [vmem:[#allocation2 + $0x81] sm:$0xff] %vm216_vm0, %v281_v12 }
  0x2d   : > { %315 = vst.msk [vmem:[#allocation2 + $0x91] sm:$0xff] %vm216_vm0, %v282_v13  ;;  %316 = vst.msk [vmem:[#allocation2 + $0x99] sm:$0xff] %vm216_vm0, %v283_v14 }
  0x2e   : > { %317 = vst.msk [vmem:[#allocation2 + $0xa9] sm:$0xff] %vm216_vm0, %v284_v15  ;;  %318 = vst.msk [vmem:[#allocation2 + $0xb1] sm:$0xff] %vm216_vm0, %v285_v16 }
  0x2f   : > { %319 = vst.msk [vmem:[#allocation2 + $0xc1] sm:$0xff] %vm216_vm0, %v286_v17  ;;  %320 = vst.msk [vmem:[#allocation2 + $0xc9] sm:$0xff] %vm216_vm0, %v287_v18  ;;  %v407_v25 = vld [vmem:[#allocation2 + $0x19] sm:$0xff]  ;;  %v408_v27 = vld [vmem:[#allocation2 + $0x21] sm:$0xff] }
  0x30   : > { %321 = vst.msk [vmem:[#allocation2 + $0xd9] sm:$0xff] %vm216_vm0, %v288_v19  ;;  %322 = vst.msk [vmem:[#allocation2 + $0xe1] sm:$0xff] %vm216_vm0, %v289_v20  ;;  %v409_v26 = vld [vmem:[#allocation2 + $0x31] sm:$0xff]  ;;  %473 = vrot.lane.b32.xlu1 %v407_v25, %s2638_s20  ;;  %v410_v31 = vld [vmem:[#allocation2 + $0x39] sm:$0xff] }
  0x31   : > { %323 = vst.msk [vmem:[#allocation2 + $0xf1] sm:$0xff] %vm216_vm0, %v290_v21  ;;  %324 = vst.msk [vmem:[#allocation2 + $0xf9] sm:$0xff] %vm216_vm0, %v291_v22  ;;  %477 = vrot.lane.b32.xlu0 %v409_v26, %s2638_s20  ;;  %v411_v30 = vld [vmem:[#allocation2 + $0x49] sm:$0xff]  ;;  %v412_v39 = vld [vmem:[#allocation2 + $0x51] sm:$0xff] }
  0x32   : > { %325 = vst.msk [vmem:[#allocation2 + $0x109] sm:$0xff] %vm216_vm0, %v292_v23  ;;  %326 = vst.msk [vmem:[#allocation2 + $0x111] sm:$0xff] %vm216_vm0, %v293_v24  ;;  %v413_v32 = vld [vmem:[#allocation2 + $0x61] sm:$0xff]  ;;  %v414_v41 = vld [vmem:[#allocation2 + $0x69] sm:$0xff] }
  0x33   : > { %327 = vst.msk [vmem:[#allocation2 + $0x121] sm:$0xff] %vm216_vm0, %v294_v28  ;;  %328 = vst.msk [vmem:[#allocation2 + $0x129] sm:$0xff] %vm216_vm0, %v295_v29  ;;  %v415_v40 = vld [vmem:[#allocation2 + $0x79] sm:$0xff]  ;;  %v416_v43 = vld [vmem:[#allocation2 + $0x81] sm:$0xff] }
  0x34   : > { %475 = vrot.lane.b32.xlu1 %v408_v27, %s2638_s20  ;;  %329 = vst.msk [vmem:[#allocation2 + $0x139] sm:$0xff] %vm216_vm0, %v296_v33  ;;  %330 = vst.msk [vmem:[#allocation2 + $0x141] sm:$0xff] %vm216_vm0, %v297_v34  ;;  %v2822_v42 = vld [vmem:[#allocation2 + $0x91] sm:$0xff]  ;;  %v2830_v47 = vld [vmem:[#allocation2 + $0x99] sm:$0xff] }
  0x35   : > { %481 = vrot.lane.b32.xlu0 %v411_v30, %s2638_s20  ;;  %331 = vst.msk [vmem:[#allocation2 + $0x151] sm:$0xff] %vm216_vm0, %v298_v35  ;;  %332 = vst.msk [vmem:[#allocation2 + $0x159] sm:$0xff] %vm216_vm0, %v299_v36  ;;  %v2827_v44 = vld [vmem:[#allocation2 + $0xa9] sm:$0xff]  ;;  %v342_v46 = vld [vmem:[#allocation2 + $0x18] sm:$0xff] }
  0x36   : > { %333 = vst.msk [vmem:[#allocation2 + $0x169] sm:$0xff] %vm216_vm0, %v300_v37  ;;  %334 = vst.msk [vmem:[#allocation2 + $0x171] sm:$0xff] %vm216_vm0, %v301_v38  ;;  %v343_v49 = vld [vmem:[#allocation2 + $0x20] sm:$0xff]  ;;  %v344_v51 = vld [vmem:[#allocation2 + $0x30] sm:$0xff] }
  0x37   : > { %373 = vst.msk [vmem:[#allocation3] sm:$0xff] %vm216_vm0, %v340_v45  ;;  %375 = vst.msk [vmem:[#allocation3 + $0x10] sm:$0xff] %vm216_vm0, %v342_v46  ;;  %v2837_v50 = vld [vmem:[#allocation2 + $0xc1] sm:$0xff]  ;;  %v345_v52 = vld [vmem:[#allocation2 + $0x38] sm:$0xff] }
  0x38   : > { %479 = vrot.lane.b32.xlu1 %v410_v31, %s2638_s20  ;;  %374 = vst.msk [vmem:[#allocation3 + $0x8] sm:$0xff] %vm216_vm0, %v341_v48  ;;  %376 = vst.msk [vmem:[#allocation3 + $0x18] sm:$0xff] %vm216_vm0, %v343_v49  ;;  %v2842_v53 = vld [vmem:[#allocation2 + $0xb1] sm:$0xff]  ;;  %v346_v54 = vld [vmem:[#allocation2 + $0x48] sm:$0xff] }
  0x39   : > { %485 = vrot.lane.b32.xlu0 %v413_v32, %s2638_s20  ;;  %377 = vst.msk [vmem:[#allocation3 + $0x20] sm:$0xff] %vm216_vm0, %v344_v51  ;;  %378 = vst.msk [vmem:[#allocation3 + $0x28] sm:$0xff] %vm216_vm0, %v345_v52  ;;  %v347_v55 = vld [vmem:[#allocation2 + $0x50] sm:$0xff]  ;;  %v2846_v56 = vld [vmem:[#allocation2 + $0xd9] sm:$0xff] }
  0x3a   : > { %379 = vst.msk [vmem:[#allocation3 + $0x30] sm:$0xff] %vm216_vm0, %v346_v54  ;;  %380 = vst.msk [vmem:[#allocation3 + $0x38] sm:$0xff] %vm216_vm0, %v347_v55  ;;  %v2852_v59 = vld [vmem:[#allocation2 + $0xc8] sm:$0xff]  ;;  %v2858_v60 = vld [vmem:[#allocation2 + $0x60] sm:$0xff] }
  0x3b   : > { %335 = vst.msk [vmem:[#allocation2 + $0x181] sm:$0xff] %vm216_vm0, %v302_v57  ;;  %336 = vst.msk [vmem:[#allocation2 + $0x189] sm:$0xff] %vm216_vm0, %v303_v58  ;;  %v2860_v61 = vld [vmem:[#allocation2 + $0x68] sm:$0xff]  ;;  %v2862_v62 = vld [vmem:[#allocation2 + $0x78] sm:$0xff] }
  0x3c   : > { %483 = vrot.lane.b32.xlu1 %v412_v39, %s2638_s20  ;;  %390 = vst.msk [vmem:[#allocation3 + $0x88] sm:$0xff] %vm216_vm0, %v2852_v59  ;;  %381 = vst.msk [vmem:[#allocation3 + $0x40] sm:$0xff] %vm216_vm0, %v2858_v60  ;;  %v2872_v63 = vld [vmem:[#allocation2 + $0x80] sm:$0xff]  ;;  %v2874_v0 = vld [vmem:[#allocation2 + $0x90] sm:$0xff] }
  0x3d   : > { %489 = vrot.lane.b32.xlu0 %v415_v40, %s2638_s20  ;;  %382 = vst.msk [vmem:[#allocation3 + $0x48] sm:$0xff] %vm216_vm0, %v2860_v61  ;;  %383 = vst.msk [vmem:[#allocation3 + $0x50] sm:$0xff] %vm216_vm0, %v2862_v62  ;;  %v2876_v1 = vld [vmem:[#allocation2 + $0x98] sm:$0xff]  ;;  %v2886_v2 = vld [vmem:[#allocation2 + $0xa8] sm:$0xff] }
  0x3e   : > { %384 = vst.msk [vmem:[#allocation3 + $0x58] sm:$0xff] %vm216_vm0, %v2872_v63  ;;  %385 = vst.msk [vmem:[#allocation3 + $0x60] sm:$0xff] %vm216_vm0, %v2874_v0  ;;  %v2888_v3 = vld [vmem:[#allocation2 + $0xb0] sm:$0xff]  ;;  %v2896_v5 = vld [vmem:[#allocation2 + $0xe0] sm:$0xff] }
  0x3f   : > { %386 = vst.msk [vmem:[#allocation3 + $0x68] sm:$0xff] %vm216_vm0, %v2876_v1  ;;  %v2890_v4 = vld [vmem:[#allocation2 + $0xc9] sm:$0xff]  ;;  %387 = vst.msk [vmem:[#allocation3 + $0x70] sm:$0xff] %vm216_vm0, %v2886_v2  ;;  %v2898_v6 = vld [vmem:[#allocation2 + $0xc0] sm:$0xff] }
  0x40   : > { %487 = vrot.lane.b32.xlu1 %v414_v41, %s2638_s20  ;;  %388 = vst.msk [vmem:[#allocation3 + $0x78] sm:$0xff] %vm216_vm0, %v2888_v3  ;;  %v425_v7 = vld [vmem:[#allocation2 + $0xf1] sm:$0xff]  ;;  %389 = vst.msk [vmem:[#allocation3 + $0x80] sm:$0xff] %vm216_vm0, %v2898_v6  ;;  %v2911_v11 = vld [vmem:[#allocation2 + $0x108] sm:$0xff] }
  0x41   : > { %493 = vrot.lane.b32.xlu0 %v2822_v42, %s2638_s20  ;;  %v2904_v8 = vld [vmem:[#allocation2 + $0xd8] sm:$0xff]  ;;  %392 = vst.msk [vmem:[#allocation3 + $0x98] sm:$0xff] %vm216_vm0, %v2896_v5  ;;  %v360_v9 = vld [vmem:[#allocation2 + $0xf0] sm:$0xff]  ;;  %395 = vst.msk [vmem:[#allocation3 + $0xb0] sm:$0xff] %vm216_vm0, %v2911_v11 }
  0x42   : > { %391 = vst.msk [vmem:[#allocation3 + $0x90] sm:$0xff] %vm216_vm0, %v2904_v8  ;;  %393 = vst.msk [vmem:[#allocation3 + $0xa0] sm:$0xff] %vm216_vm0, %v360_v9  ;;  %v361_v10 = vld [vmem:[#allocation2 + $0xf8] sm:$0xff]  ;;  %v2913_v12 = vld [vmem:[#allocation2 + $0x110] sm:$0xff] }
  0x43   : > { %394 = vst.msk [vmem:[#allocation3 + $0xa8] sm:$0xff] %vm216_vm0, %v361_v10  ;;  %396 = vst.msk [vmem:[#allocation3 + $0xb8] sm:$0xff] %vm216_vm0, %v2913_v12  ;;  %v2922_v13 = vld [vmem:[#allocation2 + $0x120] sm:$0xff]  ;;  %v2924_v14 = vld [vmem:[#allocation2 + $0x128] sm:$0xff] }
  0x44   : > { %491 = vrot.lane.b32.xlu1 %v416_v43, %s2638_s20  ;;  %v2926_v15 = vld [vmem:[#allocation2 + $0xe1] sm:$0xff]  ;;  %397 = vst.msk [vmem:[#allocation3 + $0xc0] sm:$0xff] %vm216_vm0, %v2922_v13  ;;  %398 = vst.msk [vmem:[#allocation3 + $0xc8] sm:$0xff] %vm216_vm0, %v2924_v14  ;;  %v427_v16 = vld [vmem:[#allocation2 + $0x109] sm:$0xff] }
  0x45   : > { %497 = vrot.lane.b32.xlu0 %v2827_v44, %s2638_s20  ;;  %v2933_v17 = vld [vmem:[#allocation2 + $0x170] sm:$0xff]  ;;  %v2937_v18 = vld [vmem:[#allocation2 + $0x138] sm:$0xff]  ;;  %v2939_v19 = vld [vmem:[#allocation2 + $0x140] sm:$0xff] }
  0x46   : > { %404 = vst.msk [vmem:[#allocation3 + $0xf8] sm:$0xff] %vm216_vm0, %v2933_v17  ;;  %v426_v20 = vld [vmem:[#allocation2 + $0xf9] sm:$0xff]  ;;  %399 = vst.msk [vmem:[#allocation3 + $0xd0] sm:$0xff] %vm216_vm0, %v2937_v18  ;;  %v429_v21 = vld [vmem:[#allocation2 + $0x121] sm:$0xff] }
  0x47   : > { %400 = vst.msk [vmem:[#allocation3 + $0xd8] sm:$0xff] %vm216_vm0, %v2939_v19  ;;  %v2949_v22 = vld [vmem:[#allocation2 + $0x150] sm:$0xff]  ;;  %v2951_v23 = vld [vmem:[#allocation2 + $0x158] sm:$0xff]  ;;  %v2959_v26 = vld [vmem:[#allocation2 + $0x168] sm:$0xff] }
  0x48   : > { %495 = vrot.lane.b32.xlu1 %v2830_v47, %s2638_s20  ;;  %v428_v24 = vld [vmem:[#allocation2 + $0x111] sm:$0xff]  ;;  %401 = vst.msk [vmem:[#allocation3 + $0xe0] sm:$0xff] %vm216_vm0, %v2949_v22  ;;  %402 = vst.msk [vmem:[#allocation3 + $0xe8] sm:$0xff] %vm216_vm0, %v2951_v23  ;;  %v431_v25 = vld [vmem:[#allocation2 + $0x139] sm:$0xff] }
  0x49   : > { %501 = vrot.lane.b32.xlu0 %v2837_v50, %s2638_s20  ;;  %v430_v27 = vld [vmem:[#allocation2 + $0x129] sm:$0xff]  ;;  %403 = vst.msk [vmem:[#allocation3 + $0xf0] sm:$0xff] %vm216_vm0, %v2959_v26  ;;  %v2964_v28 = vld [vmem:[#allocation2 + $0x151] sm:$0xff]  ;;  %v2967_v29 = vld [vmem:[#allocation2 + $0x141] sm:$0xff] }
  0x4a   : > { %v2971_v30 = vld [vmem:[#allocation2 + $0x169] sm:$0xff]  ;;  %v2975_v31 = vld [vmem:[#allocation2 + $0x159] sm:$0xff]  ;;  %v2981_v33 = vld [vmem:[#allocation2 + $0x171] sm:$0xff] }
  0x4b   : > { %v598_v32 = vld [vmem:[#allocation2 + $0x2] sm:$0xff]  ;;  %v600_v34 = vld [vmem:[#allocation2 + $0x1a] sm:$0xff]  ;;  %v599_v35 = vld [vmem:[#allocation2 + $0xa] sm:$0xff] }
  0x4c   : > { %499 = vrot.lane.b32.xlu1 %v2842_v53, %s2638_s20  ;;  %v602_v36 = vld [vmem:[#allocation2 + $0x32] sm:$0xff]  ;;  %v601_v37 = vld [vmem:[#allocation2 + $0x22] sm:$0xff]  ;;  %v604_v38 = vld [vmem:[#allocation2 + $0x4a] sm:$0xff] }
  0x4d   : > { %505 = vrot.lane.b32.xlu0 %v2846_v56, %s2638_s20  ;;  %v603_v39 = vld [vmem:[#allocation2 + $0x3a] sm:$0xff]  ;;  %v606_v40 = vld [vmem:[#allocation2 + $0x62] sm:$0xff]  ;;  %v605_v41 = vld [vmem:[#allocation2 + $0x52] sm:$0xff] }
  0x4e   : > { %v2993_v43 = vld [vmem:[#allocation2 + $0x7a] sm:$0xff]  ;;  %v607_v45 = vld [vmem:[#allocation2 + $0x6a] sm:$0xff]  ;;  %v2998_v46 = vld [vmem:[#allocation2 + $0x92] sm:$0xff] }
  0x4f   : > { %v3001_v48 = vld [vmem:[#allocation2 + $0x82] sm:$0xff]  ;;  %v3005_v49 = vld [vmem:[#allocation2 + $0xaa] sm:$0xff]  ;;  %v3009_v51 = vld [vmem:[#allocation2 + $0x9a] sm:$0xff] }
  0x50   : > { %503 = vrot.lane.b32.xlu1 %v2890_v4, %s2638_s20  ;;  %v3013_v52 = vld [vmem:[#allocation2 + $0xc2] sm:$0xff]  ;;  %v3017_v54 = vld [vmem:[#allocation2 + $0xb2] sm:$0xff]  ;;  %v3021_v55 = vld [vmem:[#allocation2 + $0xda] sm:$0xff] }
  0x51   : > { %509 = vrot.lane.b32.xlu0 %v425_v7, %s2638_s20  ;;  %v3025_v57 = vld [vmem:[#allocation2 + $0xca] sm:$0xff]  ;;  %v618_v58 = vld [vmem:[#allocation2 + $0xf2] sm:$0xff]  ;;  %v3031_v7 = vld [vmem:[#allocation2 + $0xe2] sm:$0xff] }
  0x52   : > { %v620_v9 = vld [vmem:[#allocation2 + $0x10a] sm:$0xff]  ;;  %v619_v10 = vld [vmem:[#allocation2 + $0xfa] sm:$0xff] }
  0x54   : > { %507 = vrot.lane.b32.xlu1 %v2926_v15, %s2638_s20 }
  0x55   : > { %513 = vrot.lane.b32.xlu0 %v427_v16, %s2638_s20  ;;  %v622_v16 = vld [vmem:[#allocation2 + $0x122] sm:$0xff] }
  0x58   : > { %511 = vrot.lane.b32.xlu1 %v426_v20, %s2638_s20  ;;  %v621_v20 = vld [vmem:[#allocation2 + $0x112] sm:$0xff] }
  0x59   : > { %517 = vrot.lane.b32.xlu0 %v429_v21, %s2638_s20  ;;  %v3039_v21 = vld [vmem:[#allocation2 + $0x13a] sm:$0xff] }
  0x5c   : > { %515 = vrot.lane.b32.xlu1 %v428_v24, %s2638_s20 }
  0x5d   : > { %521 = vrot.lane.b32.xlu0 %v431_v25, %s2638_s20  ;;  %v623_v25 = vld [vmem:[#allocation2 + $0x12a] sm:$0xff] }
  0x60   : > { %519 = vrot.lane.b32.xlu1 %v430_v27, %s2638_s20  ;;  %v3045_v27 = vld [vmem:[#allocation2 + $0x152] sm:$0xff] }
  0x61   : > { %525 = vrot.lane.b32.xlu0 %v2964_v28, %s2638_s20 }
  0x64   : > { %523 = vrot.lane.b32.xlu1 %v2967_v29, %s2638_s20 }
  0x65   : > { %529 = vrot.lane.b32.xlu0 %v2971_v30, %s2638_s20 }
  0x68   : > { %527 = vrot.lane.b32.xlu1 %v2975_v31, %s2638_s20 }
  0x69   : > { %662 = vrot.lane.b32.xlu0 %v598_v32, %s2639_s21 }
  0x6c   : > { %531 = vrot.lane.b32.xlu1 %v2981_v33, %s2638_s20 }
  0x6d   : > { %666 = vrot.lane.b32.xlu0 %v600_v34, %s2639_s21  ;;  %v3048_v34 = vld [vmem:[#allocation2 + $0x142] sm:$0xff] }
  0x70   : > { %664 = vrot.lane.b32.xlu1 %v599_v35, %s2639_s21 }
  0x71   : > { %670 = vrot.lane.b32.xlu0 %v602_v36, %s2639_s21  ;;  %v3054_v36 = vld [vmem:[#allocation2 + $0x16a] sm:$0xff] }
  0x74   : > { %668 = vrot.lane.b32.xlu1 %v601_v37, %s2639_s21 }
  0x75   : > { %674 = vrot.lane.b32.xlu0 %v604_v38, %s2639_s21  ;;  %v3058_v38 = vld [vmem:[#allocation2 + $0x15a] sm:$0xff] }
  0x78   : > { %672 = vrot.lane.b32.xlu1 %v603_v39, %s2639_s21 }
  0x79   : > { %678 = vrot.lane.b32.xlu0 %v606_v40, %s2639_s21  ;;  %v3064_v40 = vld [vmem:[#allocation2 + $0x188] sm:$0xff] }
  0x7c   : > { %676 = vrot.lane.b32.xlu1 %v605_v41, %s2639_s21 }
  0x7d   : > { %682 = vrot.lane.b32.xlu0 %v2993_v43, %s2639_s21 }
  0x80   : > { %680 = vrot.lane.b32.xlu1 %v607_v45, %s2639_s21  ;;  %v3068_v45 = vld [vmem:[#allocation2 + $0x172] sm:$0xff] }
  0x81   : > { %686 = vrot.lane.b32.xlu0 %v2998_v46, %s2639_s21 }
  0x84   : > { %684 = vrot.lane.b32.xlu1 %v3001_v48, %s2639_s21 }
  0x85   : > { %690 = vrot.lane.b32.xlu0 %v3005_v49, %s2639_s21 }
  0x87   : > { %v470_v24 = vpop.permute.xlu0 %469 }
  0x88   : > { %688 = vrot.lane.b32.xlu1 %v3009_v51, %s2639_s21  ;;  %566 = vst.msk [vmem:[#allocation3] sm:$0xff] %vm565_vm2, %v470_v24 }
  0x89   : > { %694 = vrot.lane.b32.xlu0 %v3013_v52, %s2639_s21 }
  0x8c   : > { %692 = vrot.lane.b32.xlu1 %v3017_v54, %s2639_s21 }
  0x8d   : > { %698 = vrot.lane.b32.xlu0 %v3021_v55, %s2639_s21 }
  0x90   : > { %696 = vrot.lane.b32.xlu1 %v3025_v57, %s2639_s21 }
  0x91   : > { %702 = vrot.lane.b32.xlu0 %v618_v58, %s2639_s21 }
  0x94   : > { %700 = vrot.lane.b32.xlu1 %v3031_v7, %s2639_s21 }
  0x95   : > { %706 = vrot.lane.b32.xlu0 %v620_v9, %s2639_s21  ;;  %v3074_v9 = vld [vmem:[#allocation2 + $0x189] sm:$0xff] }
  0x98   : > { %704 = vrot.lane.b32.xlu1 %v619_v10, %s2639_s21 }
  0x99   : > { %710 = vrot.lane.b32.xlu0 %v622_v16, %s2639_s21  ;;  %v472_v32 = vpop.permute.xlu0 %471 }
  0x9a   : > { %567 = vst.msk [vmem:[#allocation3 + $0x8] sm:$0xff] %vm565_vm2, %v472_v32  ;;  %v2444_v32 = vld [vmem:[#allocation2 + $0x1a0] sm:$0xff] }
  0x9c   : > { %708 = vrot.lane.b32.xlu1 %v621_v20, %s2639_s21  ;;  %v3082_v20 = vld [vmem:[#allocation2 + $0x18a] sm:$0xff] }
  0x9d   : > { %714 = vrot.lane.b32.xlu0 %v3039_v21, %s2639_s21 }
  0xa0   : > { %712 = vrot.lane.b32.xlu1 %v623_v25, %s2639_s21 }
  0xa1   : > { %718 = vrot.lane.b32.xlu0 %v3045_v27, %s2639_s21 }
  0xa2   : > { %v474_v35 = vpop.permute.xlu1 %473 }
  0xa3   : > { %568 = vst.msk [vmem:[#allocation3 + $0x10] sm:$0xff] %vm565_vm2, %v474_v35  ;;  %v478_v37 = vpop.permute.xlu0 %477 }
  0xa4   : > { %716 = vrot.lane.b32.xlu1 %v3048_v34, %s2639_s21  ;;  %570 = vst.msk [vmem:[#allocation3 + $0x20] sm:$0xff] %vm565_vm2, %v478_v37 }
  0xa5   : > { %722 = vrot.lane.b32.xlu0 %v3054_v36, %s2639_s21 }
  0xa6   : > { %v476_v39 = vpop.permute.xlu1 %475 }
  0xa7   : > { %569 = vst.msk [vmem:[#allocation3 + $0x18] sm:$0xff] %vm565_vm2, %v476_v39  ;;  %v482_v41 = vpop.permute.xlu0 %481 }
  0xa8   : > { %720 = vrot.lane.b32.xlu1 %v3058_v38, %s2639_s21  ;;  %572 = vst.msk [vmem:[#allocation3 + $0x30] sm:$0xff] %vm565_vm2, %v482_v41  ;;  %v3097_v41 = vld [vmem:[#allocation2 + $0x180] sm:$0xff] }
  0xa9   : > { %920 = vrot.lane.b32.xlu0 %v3064_v40, %s2640_s22 }
  0xaa   : > { %v480_v58 = vpop.permute.xlu1 %479 }
  0xab   : > { %571 = vst.msk [vmem:[#allocation3 + $0x28] sm:$0xff] %vm565_vm2, %v480_v58  ;;  %v486_v10 = vpop.permute.xlu0 %485 }
  0xac   : > { %724 = vrot.lane.b32.xlu1 %v3068_v45, %s2639_s21  ;;  %574 = vst.msk [vmem:[#allocation3 + $0x40] sm:$0xff] %vm565_vm2, %v486_v10 }
  0xad   : > { %1113 = vrot.lane.b32.xlu0 %v3074_v9, %s2641_s23 }
  0xae   : > { %v484_v16 = vpop.permute.xlu1 %483 }
  0xaf   : > { %573 = vst.msk [vmem:[#allocation3 + $0x38] sm:$0xff] %vm565_vm2, %v484_v16  ;;  %v490_v24 = vpop.permute.xlu0 %489  ;;  %v2476_v16 = vld [vmem:[#allocation2 + $0x1a1] sm:$0xff] }
  0xb0   : > { %888 = vrot.lane.b32.xlu1 %v2852_v59, %s2640_s22  ;;  %576 = vst.msk [vmem:[#allocation3 + $0x50] sm:$0xff] %vm565_vm2, %v490_v24 }
  0xb1   : > { %1306 = vrot.lane.b32.xlu0 %v3082_v20, %s2642_s24 }
  0xb2   : > { %v488_v25 = vpop.permute.xlu1 %487 }
  0xb3   : > { %575 = vst.msk [vmem:[#allocation3 + $0x48] sm:$0xff] %vm565_vm2, %v488_v25  ;;  %v494_v35 = vpop.permute.xlu0 %493 }
  0xb4   : > { %1081 = vrot.lane.b32.xlu1 %v2890_v4, %s2641_s23  ;;  %578 = vst.msk [vmem:[#allocation3 + $0x60] sm:$0xff] %vm565_vm2, %v494_v35 }
  0xb5   : > { %1502 = vrot.lane.b32.xlu0 %v2444_v32, %s2643_s25 }
  0xb6   : > { %v492_v37 = vpop.permute.xlu1 %491 }
  0xb7   : > { %577 = vst.msk [vmem:[#allocation3 + $0x58] sm:$0xff] %vm565_vm2, %v492_v37  ;;  %v498_v39 = vpop.permute.xlu0 %497  ;;  %v2508_v37 = vld [vmem:[#allocation2 + $0x1a2] sm:$0xff] }
  0xb8   : > { %1274 = vrot.lane.b32.xlu1 %v3025_v57, %s2642_s24  ;;  %580 = vst.msk [vmem:[#allocation3 + $0x70] sm:$0xff] %vm565_vm2, %v498_v39 }
  0xb9   : > { %1470 = vrot.lane.b32.xlu0 %v2896_v5, %s2643_s25  ;;  %v3110_v5 = vld [vmem:[#allocation2 + $0x181] sm:$0xff] }
  0xba   : > { %v496_v58 = vpop.permute.xlu1 %495 }
  0xbb   : > { %579 = vst.msk [vmem:[#allocation3 + $0x68] sm:$0xff] %vm565_vm2, %v496_v58  ;;  %v502_v10 = vpop.permute.xlu0 %501 }
  0xbc   : > { %918 = vrot.lane.b32.xlu1 %v3097_v41, %s2640_s22  ;;  %582 = vst.msk [vmem:[#allocation3 + $0x80] sm:$0xff] %vm565_vm2, %v502_v10 }
  0xbd   : > { %886 = vrot.lane.b32.xlu0 %v2898_v6, %s2640_s22 }
  0xbe   : > { %v500_v24 = vpop.permute.xlu1 %499 }
  0xbf   : > { %581 = vst.msk [vmem:[#allocation3 + $0x78] sm:$0xff] %vm565_vm2, %v500_v24  ;;  %v506_v25 = vpop.permute.xlu0 %505 }
  0xc0   : > { %1695 = vrot.lane.b32.xlu1 %v2476_v16, %s2644_s26  ;;  %584 = vst.msk [vmem:[#allocation3 + $0x90] sm:$0xff] %vm565_vm2, %v506_v25  ;;  %v2443_v16 = vld [vmem:[#allocation2 + $0x198] sm:$0xff] }
  0xc1   : > { %1663 = vrot.lane.b32.xlu0 %v2926_v15, %s2644_s26  ;;  %v3123_v15 = vld [vmem:[#allocation2 + $0x182] sm:$0xff] }
  0xc2   : > { %v504_v32 = vpop.permute.xlu1 %503 }
  0xc3   : > { %583 = vst.msk [vmem:[#allocation3 + $0x88] sm:$0xff] %vm565_vm2, %v504_v32  ;;  %v510_v35 = vpop.permute.xlu0 %509 }
  0xc4   : > { %1111 = vrot.lane.b32.xlu1 %v3110_v5, %s2641_s23  ;;  %586 = vst.msk [vmem:[#allocation3 + $0xa0] sm:$0xff] %vm565_vm2, %v510_v35 }
  0xc5   : > { %1079 = vrot.lane.b32.xlu0 %v2837_v50, %s2641_s23 }
  0xc6   : > { %v508_v39 = vpop.permute.xlu1 %507 }
  0xc7   : > { %585 = vst.msk [vmem:[#allocation3 + $0x98] sm:$0xff] %vm565_vm2, %v508_v39  ;;  %v514_v58 = vpop.permute.xlu0 %513 }
  0xc8   : > { %1888 = vrot.lane.b32.xlu1 %v2508_v37, %s2645_s27  ;;  %588 = vst.msk [vmem:[#allocation3 + $0xb0] sm:$0xff] %vm565_vm2, %v514_v58  ;;  %v2475_v37 = vld [vmem:[#allocation2 + $0x199] sm:$0xff] }
  0xc9   : > { %1856 = vrot.lane.b32.xlu0 %v3031_v7, %s2645_s27 }
  0xca   : > { %v512_v10 = vpop.permute.xlu1 %511 }
  0xcb   : > { %587 = vst.msk [vmem:[#allocation3 + $0xa8] sm:$0xff] %vm565_vm2, %v512_v10  ;;  %v518_v24 = vpop.permute.xlu0 %517 }
  0xcc   : > { %1304 = vrot.lane.b32.xlu1 %v3123_v15, %s2642_s24  ;;  %590 = vst.msk [vmem:[#allocation3 + $0xc0] sm:$0xff] %vm565_vm2, %v518_v24 }
  0xcd   : > { %1500 = vrot.lane.b32.xlu0 %v2443_v16, %s2643_s25  ;;  %v2507_v16 = vld [vmem:[#allocation2 + $0x19a] sm:$0xff] }
  0xce   : > { %v516_v25 = vpop.permute.xlu1 %515 }
  0xcf   : > { %589 = vst.msk [vmem:[#allocation3 + $0xb8] sm:$0xff] %vm565_vm2, %v516_v25  ;;  %v522_v32 = vpop.permute.xlu0 %521 }
  0xd0   : > { %1272 = vrot.lane.b32.xlu1 %v3013_v52, %s2642_s24  ;;  %592 = vst.msk [vmem:[#allocation3 + $0xd0] sm:$0xff] %vm565_vm2, %v522_v32 }
  0xd1   : > { %1468 = vrot.lane.b32.xlu0 %v2904_v8, %s2643_s25 }
  0xd2   : > { %v520_v7 = vpop.permute.xlu1 %519 }
  0xd3   : > { %591 = vst.msk [vmem:[#allocation3 + $0xc8] sm:$0xff] %vm565_vm2, %v520_v7  ;;  %v526_v35 = vpop.permute.xlu0 %525 }
  0xd4   : > { %916 = vrot.lane.b32.xlu1 %v2933_v17, %s2640_s22  ;;  %594 = vst.msk [vmem:[#allocation3 + $0xe0] sm:$0xff] %vm565_vm2, %v526_v35 }
  0xd5   : > { %884 = vrot.lane.b32.xlu0 %v2888_v3, %s2640_s22 }
  0xd6   : > { %v524_v39 = vpop.permute.xlu1 %523 }
  0xd7   : > { %593 = vst.msk [vmem:[#allocation3 + $0xd8] sm:$0xff] %vm565_vm2, %v524_v39  ;;  %v530_v58 = vpop.permute.xlu0 %529 }
  0xd8   : > { %1693 = vrot.lane.b32.xlu1 %v2475_v37, %s2644_s26  ;;  %596 = vst.msk [vmem:[#allocation3 + $0xf0] sm:$0xff] %vm565_vm2, %v530_v58 }
  0xd9   : > { %1661 = vrot.lane.b32.xlu0 %v2846_v56, %s2644_s26 }
  0xda   : > { %v528_v8 = vpop.permute.xlu1 %527 }
  0xdb   : > { %595 = vst.msk [vmem:[#allocation3 + $0xe8] sm:$0xff] %vm565_vm2, %v528_v8  ;;  %v663_v10 = vpop.permute.xlu0 %662 }
  0xdc   : > { %1109 = vrot.lane.b32.xlu1 %v2981_v33, %s2641_s23  ;;  %759 = vst.msk [vmem:[#allocation3] sm:$0xff] %vm758_vm3, %v663_v10 }
  0xdd   : > { %1077 = vrot.lane.b32.xlu0 %v2842_v53, %s2641_s23 }
  0xde   : > { %v532_v24 = vpop.permute.xlu1 %531 }
  0xdf   : > { %597 = vst.msk [vmem:[#allocation3 + $0xf8] sm:$0xff] %vm565_vm2, %v532_v24  ;;  %v667_v25 = vpop.permute.xlu0 %666 }
  0xe0   : > { %1886 = vrot.lane.b32.xlu1 %v2507_v16, %s2645_s27  ;;  %761 = vst.msk [vmem:[#allocation3 + $0x10] sm:$0xff] %vm758_vm3, %v667_v25 }
  0xe1   : > { %1854 = vrot.lane.b32.xlu0 %v3021_v55, %s2645_s27 }
  0xe2   : > { %v665_v56 = vpop.permute.xlu1 %664 }
  0xe3   : > { %760 = vst.msk [vmem:[#allocation3 + $0x8] sm:$0xff] %vm758_vm3, %v665_v56  ;;  %v671_v32 = vpop.permute.xlu0 %670 }
  0xe4   : > { %1302 = vrot.lane.b32.xlu1 %v3068_v45, %s2642_s24  ;;  %763 = vst.msk [vmem:[#allocation3 + $0x20] sm:$0xff] %vm758_vm3, %v671_v32 }
  0xe5   : > { %1498 = vrot.lane.b32.xlu0 %v3064_v40, %s2643_s25 }
  0xe6   : > { %v669_v7 = vpop.permute.xlu1 %668 }
  0xe7   : > { %762 = vst.msk [vmem:[#allocation3 + $0x18] sm:$0xff] %vm758_vm3, %v669_v7  ;;  %v675_v35 = vpop.permute.xlu0 %674 }
  0xe8   : > { %1270 = vrot.lane.b32.xlu1 %v3017_v54, %s2642_s24  ;;  %765 = vst.msk [vmem:[#allocation3 + $0x30] sm:$0xff] %vm758_vm3, %v675_v35 }
  0xe9   : > { %1466 = vrot.lane.b32.xlu0 %v2852_v59, %s2643_s25 }
  0xea   : > { %v673_v55 = vpop.permute.xlu1 %672 }
  0xeb   : > { %764 = vst.msk [vmem:[#allocation3 + $0x28] sm:$0xff] %vm758_vm3, %v673_v55  ;;  %v679_v37 = vpop.permute.xlu0 %678 }
  0xec   : > { %914 = vrot.lane.b32.xlu1 %v2959_v26, %s2640_s22  ;;  %767 = vst.msk [vmem:[#allocation3 + $0x40] sm:$0xff] %vm758_vm3, %v679_v37 }
  0xed   : > { %882 = vrot.lane.b32.xlu0 %v2886_v2, %s2640_s22 }
  0xee   : > { %v677_v40 = vpop.permute.xlu1 %676 }
  0xef   : > { %766 = vst.msk [vmem:[#allocation3 + $0x38] sm:$0xff] %vm758_vm3, %v677_v40  ;;  %v683_v39 = vpop.permute.xlu0 %682 }
  0xf0   : > { %1691 = vrot.lane.b32.xlu1 %v3074_v9, %s2644_s26  ;;  %769 = vst.msk [vmem:[#allocation3 + $0x50] sm:$0xff] %vm758_vm3, %v683_v39 }
  0xf1   : > { %1659 = vrot.lane.b32.xlu0 %v2890_v4, %s2644_s26 }
  0xf2   : > { %v681_v59 = vpop.permute.xlu1 %680 }
  0xf3   : > { %768 = vst.msk [vmem:[#allocation3 + $0x48] sm:$0xff] %vm758_vm3, %v681_v59  ;;  %v687_v58 = vpop.permute.xlu0 %686  ;;  %v3293_v59 = vld [vmem:[#allocation2 + $0x81] sm:$0xff] }
  0xf4   : > { %1107 = vrot.lane.b32.xlu1 %v2971_v30, %s2641_s23  ;;  %771 = vst.msk [vmem:[#allocation3 + $0x60] sm:$0xff] %vm758_vm3, %v687_v58 }
  0xf5   : > { %1075 = vrot.lane.b32.xlu0 %v2827_v44, %s2641_s23 }
  0xf6   : > { %v685_v8 = vpop.permute.xlu1 %684 }
  0xf7   : > { %770 = vst.msk [vmem:[#allocation3 + $0x58] sm:$0xff] %vm758_vm3, %v685_v8  ;;  %v691_v9 = vpop.permute.xlu0 %690 }
  0xf8   : > { %1884 = vrot.lane.b32.xlu1 %v3082_v20, %s2645_s27  ;;  %773 = vst.msk [vmem:[#allocation3 + $0x70] sm:$0xff] %vm758_vm3, %v691_v9 }
  0xf9   : > { %1852 = vrot.lane.b32.xlu0 %v3025_v57, %s2645_s27 }
  0xfa   : > { %v689_v4 = vpop.permute.xlu1 %688 }
  0xfb   : > { %772 = vst.msk [vmem:[#allocation3 + $0x68] sm:$0xff] %vm758_vm3, %v689_v4  ;;  %v695_v10 = vpop.permute.xlu0 %694 }
  0xfc   : > { %1300 = vrot.lane.b32.xlu1 %v3054_v36, %s2642_s24  ;;  %775 = vst.msk [vmem:[#allocation3 + $0x80] sm:$0xff] %vm758_vm3, %v695_v10 }
  0xfd   : > { %1496 = vrot.lane.b32.xlu0 %v3097_v41, %s2643_s25 }
  0xfe   : > { %v693_v44 = vpop.permute.xlu1 %692 }
  0xff   : > { %774 = vst.msk [vmem:[#allocation3 + $0x78] sm:$0xff] %vm758_vm3, %v693_v44  ;;  %v699_v20 = vpop.permute.xlu0 %698 }
 0x100   : > { %1268 = vrot.lane.b32.xlu1 %v3005_v49, %s2642_s24  ;;  %777 = vst.msk [vmem:[#allocation3 + $0x90] sm:$0xff] %vm758_vm3, %v699_v20 }
 0x101   : > { %1464 = vrot.lane.b32.xlu0 %v2898_v6, %s2643_s25 }
 0x102   : > { %v697_v57 = vpop.permute.xlu1 %696 }
 0x103   : > { %776 = vst.msk [vmem:[#allocation3 + $0x88] sm:$0xff] %vm758_vm3, %v697_v57  ;;  %v703_v16 = vpop.permute.xlu0 %702 }
 0x104   : > { %912 = vrot.lane.b32.xlu1 %v2951_v23, %s2640_s22  ;;  %779 = vst.msk [vmem:[#allocation3 + $0xa0] sm:$0xff] %vm758_vm3, %v703_v16  ;;  %v3334_v16 = vld [vmem:[#allocation2 + $0x79] sm:$0xff] }
 0x105   : > { %880 = vrot.lane.b32.xlu0 %v2876_v1, %s2640_s22 }
 0x106   : > { %v701_v41 = vpop.permute.xlu1 %700 }
 0x107   : > { %778 = vst.msk [vmem:[#allocation3 + $0x98] sm:$0xff] %vm758_vm3, %v701_v41  ;;  %v707_v24 = vpop.permute.xlu0 %706 }
 0x108   : > { %1689 = vrot.lane.b32.xlu1 %v3110_v5, %s2644_s26  ;;  %781 = vst.msk [vmem:[#allocation3 + $0xb0] sm:$0xff] %vm758_vm3, %v707_v24 }
 0x109   : > { %1657 = vrot.lane.b32.xlu0 %v2837_v50, %s2644_s26 }
 0x10a   : > { %v705_v6 = vpop.permute.xlu1 %704 }
 0x10b   : > { %780 = vst.msk [vmem:[#allocation3 + $0xa8] sm:$0xff] %vm758_vm3, %v705_v6  ;;  %v711_v25 = vpop.permute.xlu0 %710 }
 0x10c   : > { %1105 = vrot.lane.b32.xlu1 %v2975_v31, %s2641_s23  ;;  %783 = vst.msk [vmem:[#allocation3 + $0xc0] sm:$0xff] %vm758_vm3, %v711_v25 }
 0x10d   : > { %1073 = vrot.lane.b32.xlu0 %v2830_v47, %s2641_s23 }
 0x10e   : > { %v709_v56 = vpop.permute.xlu1 %708 }
 0x10f   : > { %782 = vst.msk [vmem:[#allocation3 + $0xb8] sm:$0xff] %vm758_vm3, %v709_v56  ;;  %v715_v5 = vpop.permute.xlu0 %714 }
 0x110   : > { %1882 = vrot.lane.b32.xlu1 %v3123_v15, %s2645_s27  ;;  %785 = vst.msk [vmem:[#allocation3 + $0xd0] sm:$0xff] %vm758_vm3, %v715_v5 }
 0x111   : > { %1850 = vrot.lane.b32.xlu0 %v3013_v52, %s2645_s27 }
 0x112   : > { %v713_v50 = vpop.permute.xlu1 %712 }
 0x113   : > { %784 = vst.msk [vmem:[#allocation3 + $0xc8] sm:$0xff] %vm758_vm3, %v713_v50  ;;  %v719_v32 = vpop.permute.xlu0 %718  ;;  %v2469_v50 = vld [vmem:[#allocation2 + $0x151] sm:$0xff] }
 0x114   : > { %1298 = vrot.lane.b32.xlu1 %v3058_v38, %s2642_s24  ;;  %787 = vst.msk [vmem:[#allocation3 + $0xe0] sm:$0xff] %vm758_vm3, %v719_v32 }
 0x115   : > { %1494 = vrot.lane.b32.xlu0 %v2933_v17, %s2643_s25 }
 0x116   : > { %v717_v47 = vpop.permute.xlu1 %716 }
 0x117   : > { %786 = vst.msk [vmem:[#allocation3 + $0xd8] sm:$0xff] %vm758_vm3, %v717_v47  ;;  %v723_v15 = vpop.permute.xlu0 %722 }
 0x118   : > { %1266 = vrot.lane.b32.xlu1 %v3009_v51, %s2642_s24  ;;  %789 = vst.msk [vmem:[#allocation3 + $0xf0] sm:$0xff] %vm758_vm3, %v723_v15  ;;  %v3374_v15 = vld [vmem:[#allocation2 + $0x69] sm:$0xff] }
 0x119   : > { %1462 = vrot.lane.b32.xlu0 %v2888_v3, %s2643_s25 }
 0x11a   : > { %v721_v52 = vpop.permute.xlu1 %720 }
 0x11b   : > { %788 = vst.msk [vmem:[#allocation3 + $0xe8] sm:$0xff] %vm758_vm3, %v721_v52  ;;  %v921_v7 = vpop.permute.xlu0 %920 }
 0x11c   : > { %910 = vrot.lane.b32.xlu1 %v2949_v22, %s2640_s22 }
 0x11d   : > { %878 = vrot.lane.b32.xlu0 %v2874_v0, %s2640_s22 }
 0x11e   : > { %v725_v17 = vpop.permute.xlu1 %724 }
 0x11f   : > { %790 = vst.msk [vmem:[#allocation3 + $0xf8] sm:$0xff] %vm758_vm3, %v725_v17  ;;  %v1114_v3 = vpop.permute.xlu0 %1113 }
 0x120   : > { %1687 = vrot.lane.b32.xlu1 %v2981_v33, %s2644_s26  ;;  %986 = vst.msk [vmem:[#allocation3 + $0xf8] sm:$0xff] %vm954_vm4, %v921_v7  ;;  %v2485_v7 = vld [vmem:[#allocation2 + $0x92] sm:$0xff] }
 0x121   : > { %1179 = vst.msk [vmem:[#allocation3 + $0xf8] sm:$0xff] %vm1147_vm5, %v1114_v3  ;;  %1655 = vrot.lane.b32.xlu0 %v2842_v53, %s2644_s26  ;;  %v3384_v3 = vld [vmem:[#allocation2 + $0x12a] sm:$0xff] }
 0x122   : > { %v889_v35 = vpop.permute.xlu1 %888 }
 0x123   : > { %970 = vst.msk [vmem:[#allocation3 + $0x78] sm:$0xff] %vm954_vm4, %v889_v35  ;;  %v1307_v55 = vpop.permute.xlu0 %1306 }
 0x124   : > { %1103 = vrot.lane.b32.xlu1 %v2964_v28, %s2641_s23  ;;  %1372 = vst.msk [vmem:[#allocation3 + $0xf8] sm:$0xff] %vm1340_vm6, %v1307_v55 }
 0x125   : > { %1071 = vrot.lane.b32.xlu0 %v2822_v42, %s2641_s23 }
 0x126   : > { %v1082_v37 = vpop.permute.xlu1 %1081 }
 0x127   : > { %1163 = vst.msk [vmem:[#allocation3 + $0x78] sm:$0xff] %vm1147_vm5, %v1082_v37  ;;  %v1503_v53 = vpop.permute.xlu0 %1502 }
 0x128   : > { %1880 = vrot.lane.b32.xlu1 %v3068_v45, %s2645_s27  ;;  %1568 = vst.msk [vmem:[#allocation3 + $0xf8] sm:$0xff] %vm1536_vm7, %v1503_v53 }
 0x129   : > { %1848 = vrot.lane.b32.xlu0 %v3017_v54, %s2645_s27 }
 0x12a   : > { %v1275_v33 = vpop.permute.xlu1 %1274 }
 0x12b   : > { %1356 = vst.msk [vmem:[#allocation3 + $0x78] sm:$0xff] %vm1340_vm6, %v1275_v33  ;;  %v1471_v28 = vpop.permute.xlu0 %1470  ;;  %v3392_v33 = vld [vmem:[#allocation2 + $0x6a] sm:$0xff] }
 0x12c   : > { %1296 = vrot.lane.b32.xlu1 %v3045_v27, %s2642_s24  ;;  %1552 = vst.msk [vmem:[#allocation3 + $0x78] sm:$0xff] %vm1536_vm7, %v1471_v28 }
 0x12d   : > { %1492 = vrot.lane.b32.xlu0 %v2959_v26, %s2643_s25 }
 0x12e   : > { %v919_v42 = vpop.permute.xlu1 %918 }
 0x12f   : > { %985 = vst.msk [vmem:[#allocation3 + $0xf0] sm:$0xff] %vm954_vm4, %v919_v42  ;;  %v887_v45 = vpop.permute.xlu0 %886 }
 0x130   : > { %1264 = vrot.lane.b32.xlu1 %v2998_v46, %s2642_s24  ;;  %969 = vst.msk [vmem:[#allocation3 + $0x70] sm:$0xff] %vm954_vm4, %v887_v45  ;;  %v2455_v46 = vld [vmem:[#allocation2 + $0xa9] sm:$0xff] }
 0x131   : > { %1460 = vrot.lane.b32.xlu0 %v2886_v2, %s2643_s25 }
 0x132   : > { %v1696_v54 = vpop.permute.xlu1 %1695 }
 0x133   : > { %1761 = vst.msk [vmem:[#allocation3 + $0xf8] sm:$0xff] %vm1729_vm8, %v1696_v54  ;;  %v1664_v40 = vpop.permute.xlu0 %1663  ;;  %v2468_v54 = vld [vmem:[#allocation2 + $0x141] sm:$0xff] }
 0x134   : > { %908 = vrot.lane.b32.xlu1 %v2939_v19, %s2640_s22  ;;  %1745 = vst.msk [vmem:[#allocation3 + $0x78] sm:$0xff] %vm1729_vm8, %v1664_v40 }
 0x135   : > { %876 = vrot.lane.b32.xlu0 %v2872_v63, %s2640_s22 }
 0x136   : > { %v1112_v26 = vpop.permute.xlu1 %1111 }
 0x137   : > { %1178 = vst.msk [vmem:[#allocation3 + $0xf0] sm:$0xff] %vm1147_vm5, %v1112_v26  ;;  %v1080_v2 = vpop.permute.xlu0 %1079  ;;  %v3412_v26 = vld [vmem:[#allocation2 + $0x121] sm:$0xff] }
 0x138   : > { %1685 = vrot.lane.b32.xlu1 %v2971_v30, %s2644_s26  ;;  %1162 = vst.msk [vmem:[#allocation3 + $0x70] sm:$0xff] %vm1147_vm5, %v1080_v2 }
 0x139   : > { %1653 = vrot.lane.b32.xlu0 %v2455_v46, %s2644_s26  ;;  %v2500_v46 = vld [vmem:[#allocation2 + $0x142] sm:$0xff] }
 0x13a   : > { %v1889_v39 = vpop.permute.xlu1 %1888 }
 0x13b   : > { %1954 = vst.msk [vmem:[#allocation3 + $0xf8] sm:$0xff] %vm1922_vm9, %v1889_v39  ;;  %v1857_v58 = vpop.permute.xlu0 %1856  ;;  %v2484_v39 = vld [vmem:[#allocation2 + $0x82] sm:$0xff] }
 0x13c   : > { %1101 = vrot.lane.b32.xlu1 %v2967_v29, %s2641_s23  ;;  %1938 = vst.msk [vmem:[#allocation3 + $0x78] sm:$0xff] %vm1922_vm9, %v1857_v58  ;;  %v3427_v58 = vld [vmem:[#allocation2 + $0x122] sm:$0xff] }
 0x13d   : > { %1069 = vrot.lane.b32.xlu0 %v3293_v59, %s2641_s23 }
 0x13e   : > { %v1305_v8 = vpop.permute.xlu1 %1304 }
 0x13f   : > { %1371 = vst.msk [vmem:[#allocation3 + $0xf0] sm:$0xff] %vm1340_vm6, %v1305_v8  ;;  %v1501_v30 = vpop.permute.xlu0 %1500 }
 0x140   : > { %1878 = vrot.lane.b32.xlu1 %v3054_v36, %s2645_s27  ;;  %1567 = vst.msk [vmem:[#allocation3 + $0xf0] sm:$0xff] %vm1536_vm7, %v1501_v30 }
 0x141   : > { %1846 = vrot.lane.b32.xlu0 %v3005_v49, %s2645_s27 }
 0x142   : > { %v1273_v9 = vpop.permute.xlu1 %1272  ;;  %v1986_v4 = vld [vmem:[#allocation3 + $0xf8] sm:$0xff] }
 0x143   : > { %1355 = vst.msk [vmem:[#allocation3 + $0x70] sm:$0xff] %vm1340_vm6, %v1273_v9  ;;  %2546 = vmatprep.subr.msk.mxu0 %vm1988_vm10, %v1986_v4  ;;  %v1469_v29 = vpop.permute.xlu0 %1468  ;;  %v1970_v10 = vld [vmem:[#allocation3 + $0x78] sm:$0xff] }
 0x144   : > { %1294 = vrot.lane.b32.xlu1 %v3048_v34, %s2642_s24  ;;  %1551 = vst.msk [vmem:[#allocation3 + $0x70] sm:$0xff] %vm1536_vm7, %v1469_v29  ;;  %2547 = vmatpush3.xpose.msk.msra.mxu0 %vm1988_vm10, %v1970_v10  ;;  %v3435_v29 = vld [vmem:[#allocation2 + $0x62] sm:$0xff] }
 0x145   : > { %1490 = vrot.lane.b32.xlu0 %v2951_v23, %s2643_s25 }
 0x146   : > { %v917_v36 = vpop.permute.xlu1 %916 }
 0x147   : > { %984 = vst.msk [vmem:[#allocation3 + $0xe8] sm:$0xff] %vm954_vm4, %v917_v36  ;;  %v885_v49 = vpop.permute.xlu0 %884  ;;  %v2419_v36 = vld [vmem:[#allocation2 + $0x78] sm:$0xff] }
 0x148   : > { %1262 = vrot.lane.b32.xlu1 %v3001_v48, %s2642_s24  ;;  %968 = vst.msk [vmem:[#allocation3 + $0x68] sm:$0xff] %vm954_vm4, %v885_v49  ;;  %v2454_v48 = vld [vmem:[#allocation2 + $0x99] sm:$0xff] }
 0x149   : > { %1458 = vrot.lane.b32.xlu0 %v2876_v1, %s2643_s25  ;;  %v3329_v1 = vld [vmem:[#allocation2 + $0x139] sm:$0xff] }
 0x14a   : > { %v1694_v44 = vpop.permute.xlu1 %1693 }
 0x14b   : > { %1760 = vst.msk [vmem:[#allocation3 + $0xf0] sm:$0xff] %vm1729_vm8, %v1694_v44  ;;  %v1662_v34 = vpop.permute.xlu0 %1661 }
 0x14c   : > { %906 = vrot.lane.b32.xlu1 %v2937_v18, %s2640_s22  ;;  %1744 = vst.msk [vmem:[#allocation3 + $0x70] sm:$0xff] %vm1729_vm8, %v1662_v34  ;;  %v3447_v34 = vld [vmem:[#allocation2 + $0x50] sm:$0xff] }
 0x14d   : > { %874 = vrot.lane.b32.xlu0 %v2862_v62, %s2640_s22 }
 0x14e   : > { %v1110_v23 = vpop.permute.xlu1 %1109 }
 0x14f   : > { %1177 = vst.msk [vmem:[#allocation3 + $0xe8] sm:$0xff] %vm1147_vm5, %v1110_v23  ;;  %v1078_v20 = vpop.permute.xlu0 %1077 }
 0x150   : > { %1683 = vrot.lane.b32.xlu1 %v2975_v31, %s2644_s26  ;;  %1161 = vst.msk [vmem:[#allocation3 + $0x68] sm:$0xff] %vm1147_vm5, %v1078_v20  ;;  %v3457_v20 = vld [vmem:[#allocation2 + $0x111] sm:$0xff] }
 0x151   : > { %1651 = vrot.lane.b32.xlu0 %v2454_v48, %s2644_s26 }
 0x152   : > { %v1887_v57 = vpop.permute.xlu1 %1886 }
 0x153   : > { %1953 = vst.msk [vmem:[#allocation3 + $0xf0] sm:$0xff] %vm1922_vm9, %v1887_v57  ;;  %v1855_v62 = vpop.permute.xlu0 %1854 }
 0x154   : > { %1099 = vrot.lane.b32.xlu1 %v3329_v1, %s2641_s23  ;;  %1937 = vst.msk [vmem:[#allocation3 + $0x70] sm:$0xff] %vm1922_vm9, %v1855_v62 }
 0x155   : > { %1067 = vrot.lane.b32.xlu0 %v3334_v16, %s2641_s23 }
 0x156   : > { %v1303_v41 = vpop.permute.xlu1 %1302 }
 0x157   : > { %1370 = vst.msk [vmem:[#allocation3 + $0xe8] sm:$0xff] %vm1340_vm6, %v1303_v41  ;;  %v1499_v31 = vpop.permute.xlu0 %1498  ;;  %v2499_v41 = vld [vmem:[#allocation2 + $0x13a] sm:$0xff] }
 0x158   : > { %1876 = vrot.lane.b32.xlu1 %v3058_v38, %s2645_s27  ;;  %1566 = vst.msk [vmem:[#allocation3 + $0xe8] sm:$0xff] %vm1536_vm7, %v1499_v31  ;;  %v2483_v31 = vld [vmem:[#allocation2 + $0x7a] sm:$0xff] }
 0x159   : > { %1844 = vrot.lane.b32.xlu0 %v3009_v51, %s2645_s27 }
 0x15a   : > { %v1271_v24 = vpop.permute.xlu1 %1270  ;;  %v1985_v6 = vld [vmem:[#allocation3 + $0xf0] sm:$0xff] }
 0x15b   : > { %1354 = vst.msk [vmem:[#allocation3 + $0x68] sm:$0xff] %vm1340_vm6, %v1271_v24  ;;  %2548 = vmatprep.subr.msk.mxu0 %vm1988_vm10, %v1985_v6  ;;  %v1467_v25 = vpop.permute.xlu0 %1466  ;;  %v1969_v56 = vld [vmem:[#allocation3 + $0x70] sm:$0xff]  ;;  %v3472_v24 = vld [vmem:[#allocation2 + $0x112] sm:$0xff] }
 0x15c   : > { %1292 = vrot.lane.b32.xlu1 %v3039_v21, %s2642_s24  ;;  %1550 = vst.msk [vmem:[#allocation3 + $0x68] sm:$0xff] %vm1536_vm7, %v1467_v25  ;;  %2549 = vmatpush3.xpose.msk.msra.mxu0 %vm1988_vm10, %v1969_v56 }
 0x15d   : > { %1488 = vrot.lane.b32.xlu0 %v2949_v22, %s2643_s25 }
 0x15e   : > { %v915_v38 = vpop.permute.xlu1 %914 }
 0x15f   : > { %983 = vst.msk [vmem:[#allocation3 + $0xe0] sm:$0xff] %vm954_vm4, %v915_v38  ;;  %v883_v51 = vpop.permute.xlu0 %882 }
 0x160   : > { %1260 = vrot.lane.b32.xlu1 %v2993_v43, %s2642_s24  ;;  %967 = vst.msk [vmem:[#allocation3 + $0x60] sm:$0xff] %vm954_vm4, %v883_v51  ;;  %v2453_v43 = vld [vmem:[#allocation2 + $0x91] sm:$0xff] }
 0x161   : > { %1456 = vrot.lane.b32.xlu0 %v2874_v0, %s2643_s25  ;;  %v3369_v0 = vld [vmem:[#allocation2 + $0x129] sm:$0xff]  ;;  %v3480_v51 = vld [vmem:[#allocation2 + $0x52] sm:$0xff] }
 0x162   : > { %v1692_v5 = vpop.permute.xlu1 %1691 }
 0x163   : > { %1759 = vst.msk [vmem:[#allocation3 + $0xe8] sm:$0xff] %vm1729_vm8, %v1692_v5  ;;  %v1660_v21 = vpop.permute.xlu0 %1659 }
 0x164   : > { %904 = vrot.lane.b32.xlu1 %v2924_v14, %s2640_s22  ;;  %1743 = vst.msk [vmem:[#allocation3 + $0x68] sm:$0xff] %vm1729_vm8, %v1660_v21  ;;  %v2418_v21 = vld [vmem:[#allocation2 + $0x68] sm:$0xff] }
 0x165   : > { %872 = vrot.lane.b32.xlu0 %v2860_v61, %s2640_s22 }
 0x166   : > { %v1108_v22 = vpop.permute.xlu1 %1107 }
 0x167   : > { %1176 = vst.msk [vmem:[#allocation3 + $0xe0] sm:$0xff] %vm1147_vm5, %v1108_v22  ;;  %v1076_v32 = vpop.permute.xlu0 %1075 }
 0x168   : > { %1681 = vrot.lane.b32.xlu1 %v2469_v50, %s2644_s26  ;;  %1160 = vst.msk [vmem:[#allocation3 + $0x60] sm:$0xff] %vm1147_vm5, %v1076_v32 }
 0x169   : > { %1649 = vrot.lane.b32.xlu0 %v2453_v43, %s2644_s26  ;;  %v3492_v43 = vld [vmem:[#allocation2 + $0x48] sm:$0xff] }
 0x16a   : > { %v1885_v47 = vpop.permute.xlu1 %1884 }
 0x16b   : > { %1952 = vst.msk [vmem:[#allocation3 + $0xe8] sm:$0xff] %vm1922_vm9, %v1885_v47  ;;  %v1853_v61 = vpop.permute.xlu0 %1852 }
 0x16c   : > { %1097 = vrot.lane.b32.xlu1 %v3369_v0, %s2641_s23  ;;  %1936 = vst.msk [vmem:[#allocation3 + $0x68] sm:$0xff] %vm1922_vm9, %v1853_v61  ;;  %v3502_v61 = vld [vmem:[#allocation2 + $0x109] sm:$0xff] }
 0x16d   : > { %1065 = vrot.lane.b32.xlu0 %v3374_v15, %s2641_s23 }
 0x16e   : > { %v1301_v52 = vpop.permute.xlu1 %1300 }
 0x16f   : > { %1369 = vst.msk [vmem:[#allocation3 + $0xe0] sm:$0xff] %vm1340_vm6, %v1301_v52  ;;  %v1497_v17 = vpop.permute.xlu0 %1496 }
 0x170   : > { %1874 = vrot.lane.b32.xlu1 %v3045_v27, %s2645_s27  ;;  %1565 = vst.msk [vmem:[#allocation3 + $0xe0] sm:$0xff] %vm1536_vm7, %v1497_v17  ;;  %v3518_v17 = vld [vmem:[#allocation2 + $0x10a] sm:$0xff] }
 0x171   : > { %1842 = vrot.lane.b32.xlu0 %v2485_v7, %s2645_s27 }
 0x172   : > { %v1269_v35 = vpop.permute.xlu1 %1268  ;;  %v1984_v55 = vld [vmem:[#allocation3 + $0xe8] sm:$0xff] }
 0x173   : > { %1353 = vst.msk [vmem:[#allocation3 + $0x60] sm:$0xff] %vm1340_vm6, %v1269_v35  ;;  %2550 = vmatprep.subr.msk.mxu0 %vm1988_vm10, %v1984_v55  ;;  %v1465_v37 = vpop.permute.xlu0 %1464  ;;  %v1968_v53 = vld [vmem:[#allocation3 + $0x68] sm:$0xff] }
 0x174   : > { %1290 = vrot.lane.b32.xlu1 %v3384_v3, %s2642_s24  ;;  %1549 = vst.msk [vmem:[#allocation3 + $0x60] sm:$0xff] %vm1536_vm7, %v1465_v37  ;;  %2551 = vmatpush3.xpose.msk.msra.mxu0 %vm1988_vm10, %v1968_v53  ;;  %v2433_v37 = vld [vmem:[#allocation2 + $0x120] sm:$0xff] }
 0x175   : > { %1486 = vrot.lane.b32.xlu0 %v2939_v19, %s2643_s25 }
 0x176   : > { %v913_v27 = vpop.permute.xlu1 %912 }
 0x177   : > { %982 = vst.msk [vmem:[#allocation3 + $0xd8] sm:$0xff] %vm954_vm4, %v913_v27  ;;  %v881_v28 = vpop.permute.xlu0 %880  ;;  %v3527_v27 = vld [vmem:[#allocation2 + $0x4a] sm:$0xff] }
 0x178   : > { %1258 = vrot.lane.b32.xlu1 %v3392_v33, %s2642_s24  ;;  %966 = vst.msk [vmem:[#allocation3 + $0x58] sm:$0xff] %vm954_vm4, %v881_v28 }
 0x179   : > { %1454 = vrot.lane.b32.xlu0 %v2872_v63, %s2643_s25 }
 0x17a   : > { %v1690_v42 = vpop.permute.xlu1 %1689 }
 0x17b   : > { %1758 = vst.msk [vmem:[#allocation3 + $0xe0] sm:$0xff] %vm1729_vm8, %v1690_v42  ;;  %v1658_v45 = vpop.permute.xlu0 %1657 }
 0x17c   : > { %902 = vrot.lane.b32.xlu1 %v2922_v13, %s2640_s22  ;;  %1742 = vst.msk [vmem:[#allocation3 + $0x60] sm:$0xff] %vm1729_vm8, %v1658_v45  ;;  %v3418_v13 = vld [vmem:[#allocation2 + $0x61] sm:$0xff]  ;;  %v3535_v45 = vld [vmem:[#allocation2 + $0xf8] sm:$0xff] }
 0x17d   : > { %870 = vrot.lane.b32.xlu0 %v2858_v60, %s2640_s22 }
 0x17e   : > { %v1106_v19 = vpop.permute.xlu1 %1105 }
 0x17f   : > { %1175 = vst.msk [vmem:[#allocation3 + $0xd8] sm:$0xff] %vm1147_vm5, %v1106_v19  ;;  %v1074_v40 = vpop.permute.xlu0 %1073  ;;  %v3540_v19 = vld [vmem:[#allocation2 + $0x38] sm:$0xff] }
 0x180   : > { %1679 = vrot.lane.b32.xlu1 %v2468_v54, %s2644_s26  ;;  %1159 = vst.msk [vmem:[#allocation3 + $0x58] sm:$0xff] %vm1147_vm5, %v1074_v40 }
 0x181   : > { %1647 = vrot.lane.b32.xlu0 %v3293_v59, %s2644_s26 }
 0x182   : > { %v1883_v63 = vpop.permute.xlu1 %1882 }
 0x183   : > { %1951 = vst.msk [vmem:[#allocation3 + $0xe0] sm:$0xff] %vm1922_vm9, %v1883_v63  ;;  %v1851_v60 = vpop.permute.xlu0 %1850 }
 0x184   : > { %1095 = vrot.lane.b32.xlu1 %v3412_v26, %s2641_s23  ;;  %1935 = vst.msk [vmem:[#allocation3 + $0x60] sm:$0xff] %vm1922_vm9, %v1851_v60 }
 0x185   : > { %1063 = vrot.lane.b32.xlu0 %v3418_v13, %s2641_s23 }
 0x186   : > { %v1299_v2 = vpop.permute.xlu1 %1298 }
 0x187   : > { %1368 = vst.msk [vmem:[#allocation3 + $0xd8] sm:$0xff] %vm1340_vm6, %v1299_v2  ;;  %v1495_v59 = vpop.permute.xlu0 %1494 }
 0x188   : > { %1872 = vrot.lane.b32.xlu1 %v2500_v46, %s2645_s27  ;;  %1564 = vst.msk [vmem:[#allocation3 + $0xd8] sm:$0xff] %vm1536_vm7, %v1495_v59  ;;  %v3550_v46 = vld [vmem:[#allocation2 + $0xf9] sm:$0xff] }
 0x189   : > { %1840 = vrot.lane.b32.xlu0 %v2484_v39, %s2645_s27  ;;  %v3556_v39 = vld [vmem:[#allocation2 + $0x39] sm:$0xff] }
 0x18a   : > { %v1267_v8 = vpop.permute.xlu1 %1266  ;;  %v1983_v30 = vld [vmem:[#allocation3 + $0xe0] sm:$0xff] }
 0x18b   : > { %1352 = vst.msk [vmem:[#allocation3 + $0x58] sm:$0xff] %vm1340_vm6, %v1267_v8  ;;  %2552 = vmatprep.subr.msk.mxu0 %vm1988_vm10, %v1983_v30  ;;  %v1463_v9 = vpop.permute.xlu0 %1462  ;;  %v1967_v4 = vld [vmem:[#allocation3 + $0x60] sm:$0xff]  ;;  %v3566_v8 = vld [vmem:[#allocation2 + $0xfa] sm:$0xff] }
 0x18c   : > { %1288 = vrot.lane.b32.xlu1 %v3427_v58, %s2642_s24  ;;  %1548 = vst.msk [vmem:[#allocation3 + $0x58] sm:$0xff] %vm1536_vm7, %v1463_v9  ;;  %2553 = vmatpush3.xpose.msk.msra.mxu0 %vm1988_vm10, %v1967_v4  ;;  %v2432_v4 = vld [vmem:[#allocation2 + $0x110] sm:$0xff] }
 0x18d   : > { %1484 = vrot.lane.b32.xlu0 %v2937_v18, %s2643_s25 }
 0x18e   : > { %v911_v10 = vpop.permute.xlu1 %910 }
 0x18f   : > { %981 = vst.msk [vmem:[#allocation3 + $0xd0] sm:$0xff] %vm954_vm4, %v911_v10  ;;  %v879_v49 = vpop.permute.xlu0 %878 }
 0x190   : > { %1256 = vrot.lane.b32.xlu1 %v3435_v29, %s2642_s24  ;;  %965 = vst.msk [vmem:[#allocation3 + $0x50] sm:$0xff] %vm954_vm4, %v879_v49 }
 0x191   : > { %1452 = vrot.lane.b32.xlu0 %v2419_v36, %s2643_s25  ;;  %v3575_v36 = vld [vmem:[#allocation2 + $0x3a] sm:$0xff] }
 0x192   : > { %v1688_v44 = vpop.permute.xlu1 %1687 }
 0x193   : > { %1757 = vst.msk [vmem:[#allocation3 + $0xd8] sm:$0xff] %vm1729_vm8, %v1688_v44  ;;  %v1656_v18 = vpop.permute.xlu0 %1655  ;;  %v3583_v44 = vld [vmem:[#allocation2 + $0xf0] sm:$0xff] }
 0x194   : > { %900 = vrot.lane.b32.xlu1 %v2913_v12, %s2640_s22  ;;  %1741 = vst.msk [vmem:[#allocation3 + $0x58] sm:$0xff] %vm1729_vm8, %v1656_v18  ;;  %v3463_v12 = vld [vmem:[#allocation2 + $0x51] sm:$0xff] }
 0x195   : > { %868 = vrot.lane.b32.xlu0 %v3447_v34, %s2640_s22 }
 0x196   : > { %v1104_v23 = vpop.permute.xlu1 %1103 }
 0x197   : > { %1174 = vst.msk [vmem:[#allocation3 + $0xd0] sm:$0xff] %vm1147_vm5, %v1104_v23  ;;  %v1072_v48 = vpop.permute.xlu0 %1071  ;;  %v3589_v23 = vld [vmem:[#allocation2 + $0x30] sm:$0xff] }
 0x198   : > { %1677 = vrot.lane.b32.xlu1 %v3329_v1, %s2644_s26  ;;  %1158 = vst.msk [vmem:[#allocation3 + $0x50] sm:$0xff] %vm1147_vm5, %v1072_v48 }
 0x199   : > { %1645 = vrot.lane.b32.xlu0 %v3334_v16, %s2644_s26 }
 0x19a   : > { %v1881_v57 = vpop.permute.xlu1 %1880 }
 0x19b   : > { %1950 = vst.msk [vmem:[#allocation3 + $0xd8] sm:$0xff] %vm1922_vm9, %v1881_v57  ;;  %v1849_v62 = vpop.permute.xlu0 %1848 }
 0x19c   : > { %1093 = vrot.lane.b32.xlu1 %v3457_v20, %s2641_s23  ;;  %1934 = vst.msk [vmem:[#allocation3 + $0x58] sm:$0xff] %vm1922_vm9, %v1849_v62  ;;  %v3599_v62 = vld [vmem:[#allocation2 + $0xf1] sm:$0xff] }
 0x19d   : > { %1061 = vrot.lane.b32.xlu0 %v3463_v12, %s2641_s23 }
 0x19e   : > { %v1297_v1 = vpop.permute.xlu1 %1296 }
 0x19f   : > { %1367 = vst.msk [vmem:[#allocation3 + $0xd0] sm:$0xff] %vm1340_vm6, %v1297_v1  ;;  %v1493_v16 = vpop.permute.xlu0 %1492  ;;  %v3605_v1 = vld [vmem:[#allocation2 + $0x31] sm:$0xff] }
 0x1a0   : > { %1870 = vrot.lane.b32.xlu1 %v2499_v41, %s2645_s27  ;;  %1563 = vst.msk [vmem:[#allocation3 + $0xd0] sm:$0xff] %vm1536_vm7, %v1493_v16  ;;  %v3615_v16 = vld [vmem:[#allocation2 + $0xf2] sm:$0xff] }
 0x1a1   : > { %1838 = vrot.lane.b32.xlu0 %v2483_v31, %s2645_s27 }
 0x1a2   : > { %v1265_v6 = vpop.permute.xlu1 %1264  ;;  %v1982_v25 = vld [vmem:[#allocation3 + $0xd8] sm:$0xff] }
 0x1a3   : > { %1351 = vst.msk [vmem:[#allocation3 + $0x50] sm:$0xff] %vm1340_vm6, %v1265_v6  ;;  %2554 = vmatprep.subr.msk.mxu0 %vm1988_vm10, %v1982_v25  ;;  %v1461_v56 = vpop.permute.xlu0 %1460  ;;  %v1966_v38 = vld [vmem:[#allocation3 + $0x58] sm:$0xff] }
 0x1a4   : > { %1286 = vrot.lane.b32.xlu1 %v3472_v24, %s2642_s24  ;;  %1547 = vst.msk [vmem:[#allocation3 + $0x50] sm:$0xff] %vm1536_vm7, %v1461_v56  ;;  %2555 = vmatpush3.xpose.msk.msra.mxu0 %vm1988_vm10, %v1966_v38  ;;  %v2431_v56 = vld [vmem:[#allocation2 + $0x108] sm:$0xff] }
 0x1a5   : > { %1482 = vrot.lane.b32.xlu0 %v2924_v14, %s2643_s25 }
 0x1a6   : > { %v909_v5 = vpop.permute.xlu1 %908 }
 0x1a7   : > { %980 = vst.msk [vmem:[#allocation3 + $0xc8] sm:$0xff] %vm954_vm4, %v909_v5  ;;  %v877_v50 = vpop.permute.xlu0 %876  ;;  %v3624_v5 = vld [vmem:[#allocation2 + $0x32] sm:$0xff] }
 0x1a8   : > { %1254 = vrot.lane.b32.xlu1 %v3480_v51, %s2642_s24  ;;  %964 = vst.msk [vmem:[#allocation3 + $0x48] sm:$0xff] %vm954_vm4, %v877_v50  ;;  %v2334_v50 = vld [vmem:[#allocation2 + $0xe0] sm:$0xff] }
 0x1a9   : > { %1450 = vrot.lane.b32.xlu0 %v2418_v21, %s2643_s25 }
 0x1aa   : > { %v1686_v22 = vpop.permute.xlu1 %1685 }
 0x1ab   : > { %1756 = vst.msk [vmem:[#allocation3 + $0xd0] sm:$0xff] %vm1729_vm8, %v1686_v22  ;;  %v1654_v14 = vpop.permute.xlu0 %1653 }
 0x1ac   : > { %898 = vrot.lane.b32.xlu1 %v2911_v11, %s2640_s22  ;;  %1740 = vst.msk [vmem:[#allocation3 + $0x50] sm:$0xff] %vm1729_vm8, %v1654_v14  ;;  %v3508_v11 = vld [vmem:[#allocation2 + $0x49] sm:$0xff]  ;;  %v2318_v14 = vld [vmem:[#allocation2 + $0x20] sm:$0xff] }
 0x1ad   : > { %866 = vrot.lane.b32.xlu0 %v3492_v43, %s2640_s22 }
 0x1ae   : > { %v1102_v32 = vpop.permute.xlu1 %1101 }
 0x1af   : > { %1173 = vst.msk [vmem:[#allocation3 + $0xc8] sm:$0xff] %vm1147_vm5, %v1102_v32  ;;  %v1070_v47 = vpop.permute.xlu0 %1069 }
 0x1b0   : > { %1675 = vrot.lane.b32.xlu1 %v3369_v0, %s2644_s26  ;;  %1157 = vst.msk [vmem:[#allocation3 + $0x48] sm:$0xff] %vm1147_vm5, %v1070_v47 }
 0x1b1   : > { %1643 = vrot.lane.b32.xlu0 %v3374_v15, %s2644_s26 }
 0x1b2   : > { %v1879_v52 = vpop.permute.xlu1 %1878 }
 0x1b3   : > { %1949 = vst.msk [vmem:[#allocation3 + $0xd0] sm:$0xff] %vm1922_vm9, %v1879_v52  ;;  %v1847_v7 = vpop.permute.xlu0 %1846 }
 0x1b4   : > { %1091 = vrot.lane.b32.xlu1 %v3502_v61, %s2641_s23  ;;  %1933 = vst.msk [vmem:[#allocation3 + $0x50] sm:$0xff] %vm1922_vm9, %v1847_v7  ;;  %v2366_v7 = vld [vmem:[#allocation2 + $0xe1] sm:$0xff] }
 0x1b5   : > { %1059 = vrot.lane.b32.xlu0 %v3508_v11, %s2641_s23 }
 0x1b6   : > { %v1295_v0 = vpop.permute.xlu1 %1294 }
 0x1b7   : > { %1366 = vst.msk [vmem:[#allocation3 + $0xc8] sm:$0xff] %vm1340_vm6, %v1295_v0  ;;  %v1491_v15 = vpop.permute.xlu0 %1490  ;;  %v2350_v0 = vld [vmem:[#allocation2 + $0x21] sm:$0xff] }
 0x1b8   : > { %1868 = vrot.lane.b32.xlu1 %v3384_v3, %s2645_s27  ;;  %1562 = vst.msk [vmem:[#allocation3 + $0xc8] sm:$0xff] %vm1536_vm7, %v1491_v15 }
 0x1b9   : > { %1836 = vrot.lane.b32.xlu0 %v3392_v33, %s2645_s27  ;;  %v2417_v33 = vld [vmem:[#allocation2 + $0x60] sm:$0xff] }
 0x1ba   : > { %v1263_v35 = vpop.permute.xlu1 %1262  ;;  %v1981_v55 = vld [vmem:[#allocation3 + $0xd0] sm:$0xff] }
 0x1bb   : > { %1350 = vst.msk [vmem:[#allocation3 + $0x48] sm:$0xff] %vm1340_vm6, %v1263_v35  ;;  %2556 = vmatprep.subr.msk.mxu0 %vm1988_vm10, %v1981_v55  ;;  %v1459_v53 = vpop.permute.xlu0 %1458  ;;  %v1965_v3 = vld [vmem:[#allocation3 + $0x50] sm:$0xff] }
 0x1bc   : > { %1284 = vrot.lane.b32.xlu1 %v3518_v17, %s2642_s24  ;;  %1546 = vst.msk [vmem:[#allocation3 + $0x48] sm:$0xff] %vm1536_vm7, %v1459_v53  ;;  %2557 = vmatpush3.xpose.msk.msra.mxu0 %vm1988_vm10, %v1965_v3  ;;  %v2398_v55 = vld [vmem:[#allocation2 + $0xe2] sm:$0xff] }
 0x1bd   : > { %1480 = vrot.lane.b32.xlu0 %v2433_v37, %s2643_s25 }
 0x1be   : > { %v907_v28 = vpop.permute.xlu1 %906 }
 0x1bf   : > { %979 = vst.msk [vmem:[#allocation3 + $0xc0] sm:$0xff] %vm954_vm4, %v907_v28  ;;  %v875_v42 = vpop.permute.xlu0 %874  ;;  %v2382_v28 = vld [vmem:[#allocation2 + $0x22] sm:$0xff] }
 0x1c0   : > { %1252 = vrot.lane.b32.xlu1 %v3527_v27, %s2642_s24  ;;  %963 = vst.msk [vmem:[#allocation3 + $0x40] sm:$0xff] %vm954_vm4, %v875_v42 }
 0x1c1   : > { %1448 = vrot.lane.b32.xlu0 %v2417_v33, %s2643_s25  ;;  %v2333_v33 = vld [vmem:[#allocation2 + $0xd8] sm:$0xff] }
 0x1c2   : > { %v1684_v54 = vpop.permute.xlu1 %1683 }
 0x1c3   : > { %1755 = vst.msk [vmem:[#allocation3 + $0xc8] sm:$0xff] %vm1729_vm8, %v1684_v54  ;;  %v1652_v40 = vpop.permute.xlu0 %1651  ;;  %v2317_v54 = vld [vmem:[#allocation2 + $0x18] sm:$0xff] }
 0x1c4   : > { %896 = vrot.lane.b32.xlu1 %v3535_v45, %s2640_s22  ;;  %1739 = vst.msk [vmem:[#allocation3 + $0x48] sm:$0xff] %vm1729_vm8, %v1652_v40 }
 0x1c5   : > { %864 = vrot.lane.b32.xlu0 %v3540_v19, %s2640_s22 }
 0x1c6   : > { %v1100_v63 = vpop.permute.xlu1 %1099 }
 0x1c7   : > { %1172 = vst.msk [vmem:[#allocation3 + $0xc0] sm:$0xff] %vm1147_vm5, %v1100_v63  ;;  %v1068_v60 = vpop.permute.xlu0 %1067 }
 0x1c8   : > { %1673 = vrot.lane.b32.xlu1 %v3412_v26, %s2644_s26  ;;  %1156 = vst.msk [vmem:[#allocation3 + $0x40] sm:$0xff] %vm1147_vm5, %v1068_v60  ;;  %v2365_v60 = vld [vmem:[#allocation2 + $0xd9] sm:$0xff] }
 0x1c9   : > { %1641 = vrot.lane.b32.xlu0 %v3418_v13, %s2644_s26 }
 0x1ca   : > { %v1877_v2 = vpop.permute.xlu1 %1876 }
 0x1cb   : > { %1948 = vst.msk [vmem:[#allocation3 + $0xc8] sm:$0xff] %vm1922_vm9, %v1877_v2  ;;  %v1845_v59 = vpop.permute.xlu0 %1844  ;;  %v2349_v2 = vld [vmem:[#allocation2 + $0x19] sm:$0xff] }
 0x1cc   : > { %1089 = vrot.lane.b32.xlu1 %v3550_v46, %s2641_s23  ;;  %1932 = vst.msk [vmem:[#allocation3 + $0x48] sm:$0xff] %vm1922_vm9, %v1845_v59 }
 0x1cd   : > { %1057 = vrot.lane.b32.xlu0 %v3556_v39, %s2641_s23 }
 0x1ce   : > { %v1293_v26 = vpop.permute.xlu1 %1292 }
 0x1cf   : > { %1365 = vst.msk [vmem:[#allocation3 + $0xc0] sm:$0xff] %vm1340_vm6, %v1293_v26  ;;  %v1489_v13 = vpop.permute.xlu0 %1488 }
 0x1d0   : > { %1866 = vrot.lane.b32.xlu1 %v3427_v58, %s2645_s27  ;;  %1561 = vst.msk [vmem:[#allocation3 + $0xc0] sm:$0xff] %vm1536_vm7, %v1489_v13  ;;  %v2397_v13 = vld [vmem:[#allocation2 + $0xda] sm:$0xff] }
 0x1d1   : > { %1834 = vrot.lane.b32.xlu0 %v3435_v29, %s2645_s27 }
 0x1d2   : > { %v1261_v30 = vpop.permute.xlu1 %1260  ;;  %v1980_v9 = vld [vmem:[#allocation3 + $0xc8] sm:$0xff] }
 0x1d3   : > { %1349 = vst.msk [vmem:[#allocation3 + $0x40] sm:$0xff] %vm1340_vm6, %v1261_v30  ;;  %2558 = vmatprep.subr.msk.mxu0 %vm1988_vm10, %v1980_v9  ;;  %v1457_v10 = vpop.permute.xlu0 %1456  ;;  %v1964_v58 = vld [vmem:[#allocation3 + $0x48] sm:$0xff] }
 0x1d4   : > { %1282 = vrot.lane.b32.xlu1 %v3566_v8, %s2642_s24  ;;  %1545 = vst.msk [vmem:[#allocation3 + $0x40] sm:$0xff] %vm1536_vm7, %v1457_v10  ;;  %2559 = vmatpush3.xpose.msk.msra.mxu0 %vm1988_vm10, %v1964_v58  ;;  %v2381_v10 = vld [vmem:[#allocation2 + $0x1a] sm:$0xff] }
 0x1d5   : > { %1478 = vrot.lane.b32.xlu0 %v2432_v4, %s2643_s25 }
 0x1d6   : > { %v905_v49 = vpop.permute.xlu1 %904 }
 0x1d7   : > { %978 = vst.msk [vmem:[#allocation3 + $0xb8] sm:$0xff] %vm954_vm4, %v905_v49  ;;  %v873_v29 = vpop.permute.xlu0 %872 }
 0x1d8   : > { %1250 = vrot.lane.b32.xlu1 %v3575_v36, %s2642_s24  ;;  %962 = vst.msk [vmem:[#allocation3 + $0x38] sm:$0xff] %vm954_vm4, %v873_v29 }
 0x1d9   : > { %1446 = vrot.lane.b32.xlu0 %v3447_v34, %s2643_s25 }
 0x1da   : > { %v1682_v18 = vpop.permute.xlu1 %1681 }
 0x1db   : > { %1754 = vst.msk [vmem:[#allocation3 + $0xc0] sm:$0xff] %vm1729_vm8, %v1682_v18  ;;  %v1650_v48 = vpop.permute.xlu0 %1649 }
 0x1dc   : > { %894 = vrot.lane.b32.xlu1 %v3583_v44, %s2640_s22  ;;  %1738 = vst.msk [vmem:[#allocation3 + $0x40] sm:$0xff] %vm1729_vm8, %v1650_v48 }
 0x1dd   : > { %862 = vrot.lane.b32.xlu0 %v3589_v23, %s2640_s22 }
 0x1de   : > { %v1098_v57 = vpop.permute.xlu1 %1097 }
 0x1df   : > { %1171 = vst.msk [vmem:[#allocation3 + $0xb8] sm:$0xff] %vm1147_vm5, %v1098_v57  ;;  %v1066_v34 = vpop.permute.xlu0 %1065 }
 0x1e0   : > { %1671 = vrot.lane.b32.xlu1 %v3457_v20, %s2644_s26  ;;  %1155 = vst.msk [vmem:[#allocation3 + $0x38] sm:$0xff] %vm1147_vm5, %v1066_v34 }
 0x1e1   : > { %1639 = vrot.lane.b32.xlu0 %v3463_v12, %s2644_s26 }
 0x1e2   : > { %v1875_v41 = vpop.permute.xlu1 %1874 }
 0x1e3   : > { %1947 = vst.msk [vmem:[#allocation3 + $0xc0] sm:$0xff] %vm1922_vm9, %v1875_v41  ;;  %v1843_v31 = vpop.permute.xlu0 %1842 }
 0x1e4   : > { %1087 = vrot.lane.b32.xlu1 %v3599_v62, %s2641_s23  ;;  %1931 = vst.msk [vmem:[#allocation3 + $0x40] sm:$0xff] %vm1922_vm9, %v1843_v31 }
 0x1e5   : > { %1055 = vrot.lane.b32.xlu0 %v3605_v1, %s2641_s23 }
 0x1e6   : > { %v1291_v20 = vpop.permute.xlu1 %1290 }
 0x1e7   : > { %1364 = vst.msk [vmem:[#allocation3 + $0xb8] sm:$0xff] %vm1340_vm6, %v1291_v20  ;;  %v1487_v12 = vpop.permute.xlu0 %1486 }
 0x1e8   : > { %1864 = vrot.lane.b32.xlu1 %v3472_v24, %s2645_s27  ;;  %1560 = vst.msk [vmem:[#allocation3 + $0xb8] sm:$0xff] %vm1536_vm7, %v1487_v12 }
 0x1e9   : > { %1832 = vrot.lane.b32.xlu0 %v3480_v51, %s2645_s27 }
 0x1ea   : > { %v1259_v6 = vpop.permute.xlu1 %1258  ;;  %v1979_v25 = vld [vmem:[#allocation3 + $0xc0] sm:$0xff] }
 0x1eb   : > { %1348 = vst.msk [vmem:[#allocation3 + $0x38] sm:$0xff] %vm1340_vm6, %v1259_v6  ;;  %2560 = vmatprep.subr.msk.mxu0 %vm1988_vm10, %v1979_v25  ;;  %v1455_v38 = vpop.permute.xlu0 %1454  ;;  %v1963_v24 = vld [vmem:[#allocation3 + $0x40] sm:$0xff] }
 0x1ec   : > { %1280 = vrot.lane.b32.xlu1 %v3615_v16, %s2642_s24  ;;  %1544 = vst.msk [vmem:[#allocation3 + $0x38] sm:$0xff] %vm1536_vm7, %v1455_v38  ;;  %2561 = vmatpush3.xpose.msk.msra.mxu0 %vm1988_vm10, %v1963_v24 }
 0x1ed   : > { %1476 = vrot.lane.b32.xlu0 %v2431_v56, %s2643_s25 }
 0x1ee   : > { %v903_v21 = vpop.permute.xlu1 %902 }
 0x1ef   : > { %977 = vst.msk [vmem:[#allocation3 + $0xb0] sm:$0xff] %vm954_vm4, %v903_v21  ;;  %v871_v51 = vpop.permute.xlu0 %870 }
 0x1f0   : > { %1248 = vrot.lane.b32.xlu1 %v3624_v5, %s2642_s24  ;;  %961 = vst.msk [vmem:[#allocation3 + $0x30] sm:$0xff] %vm954_vm4, %v871_v51 }
 0x1f1   : > { %1444 = vrot.lane.b32.xlu0 %v3492_v43, %s2643_s25 }
 0x1f2   : > { %v1680_v22 = vpop.permute.xlu1 %1679 }
 0x1f3   : > { %1753 = vst.msk [vmem:[#allocation3 + $0xb8] sm:$0xff] %vm1729_vm8, %v1680_v22  ;;  %v1648_v32 = vpop.permute.xlu0 %1647 }
 0x1f4   : > { %892 = vrot.lane.b32.xlu1 %v2334_v50, %s2640_s22  ;;  %1737 = vst.msk [vmem:[#allocation3 + $0x38] sm:$0xff] %vm1729_vm8, %v1648_v32 }
 0x1f5   : > { %860 = vrot.lane.b32.xlu0 %v2318_v14, %s2640_s22 }
 0x1f6   : > { %v1096_v47 = vpop.permute.xlu1 %1095 }
 0x1f7   : > { %1170 = vst.msk [vmem:[#allocation3 + $0xb0] sm:$0xff] %vm1147_vm5, %v1096_v47  ;;  %v1064_v52 = vpop.permute.xlu0 %1063 }
 0x1f8   : > { %1669 = vrot.lane.b32.xlu1 %v3502_v61, %s2644_s26  ;;  %1154 = vst.msk [vmem:[#allocation3 + $0x30] sm:$0xff] %vm1147_vm5, %v1064_v52 }
 0x1f9   : > { %1637 = vrot.lane.b32.xlu0 %v3508_v11, %s2644_s26 }
 0x1fa   : > { %v1873_v43 = vpop.permute.xlu1 %1872 }
 0x1fb   : > { %1946 = vst.msk [vmem:[#allocation3 + $0xb8] sm:$0xff] %vm1922_vm9, %v1873_v43  ;;  %v1841_v15 = vpop.permute.xlu0 %1840 }
 0x1fc   : > { %1085 = vrot.lane.b32.xlu1 %v2366_v7, %s2641_s23  ;;  %1930 = vst.msk [vmem:[#allocation3 + $0x38] sm:$0xff] %vm1922_vm9, %v1841_v15 }
 0x1fd   : > { %1053 = vrot.lane.b32.xlu0 %v2350_v0, %s2641_s23 }
 0x1fe   : > { %v1289_v35 = vpop.permute.xlu1 %1288 }
 0x1ff   : > { %1363 = vst.msk [vmem:[#allocation3 + $0xb0] sm:$0xff] %vm1340_vm6, %v1289_v35  ;;  %v1485_v61 = vpop.permute.xlu0 %1484 }
 0x200   : > { %1862 = vrot.lane.b32.xlu1 %v3518_v17, %s2645_s27  ;;  %1559 = vst.msk [vmem:[#allocation3 + $0xb0] sm:$0xff] %vm1536_vm7, %v1485_v61 }
 0x201   : > { %1830 = vrot.lane.b32.xlu0 %v3527_v27, %s2645_s27 }
 0x202   : > { %v1257_v11 = vpop.permute.xlu1 %1256  ;;  %v1978_v37 = vld [vmem:[#allocation3 + $0xb8] sm:$0xff] }
 0x203   : > { %1347 = vst.msk [vmem:[#allocation3 + $0x30] sm:$0xff] %vm1340_vm6, %v1257_v11  ;;  %2562 = vmatprep.subr.msk.mxu0 %vm1988_vm10, %v1978_v37  ;;  %v1453_v53 = vpop.permute.xlu0 %1452  ;;  %v1962_v3 = vld [vmem:[#allocation3 + $0x38] sm:$0xff] }
 0x204   : > { %1278 = vrot.lane.b32.xlu1 %v2398_v55, %s2642_s24  ;;  %1543 = vst.msk [vmem:[#allocation3 + $0x30] sm:$0xff] %vm1536_vm7, %v1453_v53  ;;  %2563 = vmatpush3.xpose.msk.msra.mxu0 %vm1988_vm10, %v1962_v3 }
 0x205   : > { %1474 = vrot.lane.b32.xlu0 %v3535_v45, %s2643_s25 }
 0x206   : > { %v901_v17 = vpop.permute.xlu1 %900 }
 0x207   : > { %976 = vst.msk [vmem:[#allocation3 + $0xa8] sm:$0xff] %vm954_vm4, %v901_v17  ;;  %v869_v27 = vpop.permute.xlu0 %868 }
 0x208   : > { %1246 = vrot.lane.b32.xlu1 %v2382_v28, %s2642_s24  ;;  %960 = vst.msk [vmem:[#allocation3 + $0x28] sm:$0xff] %vm954_vm4, %v869_v27 }
 0x209   : > { %1442 = vrot.lane.b32.xlu0 %v3540_v19, %s2643_s25 }
 0x20a   : > { %v1678_v42 = vpop.permute.xlu1 %1677 }
 0x20b   : > { %1752 = vst.msk [vmem:[#allocation3 + $0xb0] sm:$0xff] %vm1729_vm8, %v1678_v42  ;;  %v1646_v40 = vpop.permute.xlu0 %1645 }
 0x20c   : > { %890 = vrot.lane.b32.xlu1 %v2333_v33, %s2640_s22  ;;  %1736 = vst.msk [vmem:[#allocation3 + $0x30] sm:$0xff] %vm1729_vm8, %v1646_v40 }
 0x20d   : > { %858 = vrot.lane.b32.xlu0 %v2317_v54, %s2640_s22 }
 0x20e   : > { %v1094_v45 = vpop.permute.xlu1 %1093 }
 0x20f   : > { %1169 = vst.msk [vmem:[#allocation3 + $0xa8] sm:$0xff] %vm1147_vm5, %v1094_v45  ;;  %v1062_v63 = vpop.permute.xlu0 %1061 }
 0x210   : > { %1667 = vrot.lane.b32.xlu1 %v3550_v46, %s2644_s26  ;;  %1153 = vst.msk [vmem:[#allocation3 + $0x28] sm:$0xff] %vm1147_vm5, %v1062_v63 }
 0x211   : > { %1635 = vrot.lane.b32.xlu0 %v3556_v39, %s2644_s26 }
 0x212   : > { %v1871_v19 = vpop.permute.xlu1 %1870 }
 0x213   : > { %1945 = vst.msk [vmem:[#allocation3 + $0xb0] sm:$0xff] %vm1922_vm9, %v1871_v19  ;;  %v1839_v59 = vpop.permute.xlu0 %1838 }
 0x214   : > { %1083 = vrot.lane.b32.xlu1 %v2365_v60, %s2641_s23  ;;  %1929 = vst.msk [vmem:[#allocation3 + $0x30] sm:$0xff] %vm1922_vm9, %v1839_v59 }
 0x215   : > { %1051 = vrot.lane.b32.xlu0 %v2349_v2, %s2641_s23 }
 0x216   : > { %v1287_v26 = vpop.permute.xlu1 %1286 }
 0x217   : > { %1362 = vst.msk [vmem:[#allocation3 + $0xa8] sm:$0xff] %vm1340_vm6, %v1287_v26  ;;  %v1483_v46 = vpop.permute.xlu0 %1482 }
 0x218   : > { %1860 = vrot.lane.b32.xlu1 %v3566_v8, %s2645_s27  ;;  %1558 = vst.msk [vmem:[#allocation3 + $0xa8] sm:$0xff] %vm1536_vm7, %v1483_v46 }
 0x219   : > { %1828 = vrot.lane.b32.xlu0 %v3575_v36, %s2645_s27 }
 0x21a   : > { %v1255_v39 = vpop.permute.xlu1 %1254  ;;  %v1977_v30 = vld [vmem:[#allocation3 + $0xb0] sm:$0xff] }
 0x21b   : > { %1346 = vst.msk [vmem:[#allocation3 + $0x28] sm:$0xff] %vm1340_vm6, %v1255_v39  ;;  %2564 = vmatprep.subr.msk.mxu0 %vm1988_vm10, %v1977_v30  ;;  %v1451_v9 = vpop.permute.xlu0 %1450  ;;  %v1961_v4 = vld [vmem:[#allocation3 + $0x30] sm:$0xff] }
 0x21c   : > { %1276 = vrot.lane.b32.xlu1 %v2397_v13, %s2642_s24  ;;  %1542 = vst.msk [vmem:[#allocation3 + $0x28] sm:$0xff] %vm1536_vm7, %v1451_v9  ;;  %2565 = vmatpush3.xpose.msk.msra.mxu0 %vm1988_vm10, %v1961_v4 }
 0x21d   : > { %1472 = vrot.lane.b32.xlu0 %v3583_v44, %s2643_s25  ;;  %v3709_v44 = vld [vmem:[%s3808_s1] sm:$0xff] }
 0x21e   : > { %v899_v8 = vpop.permute.xlu1 %898  ;;  %2578 = vmatprep.mubr.msk.f32.mxu0 %vm1988_vm10, %v3709_v44 }
 0x21f   : > { %975 = vst.msk [vmem:[#allocation3 + $0xa0] sm:$0xff] %vm954_vm4, %v899_v8  ;;  %v867_v58 = vpop.permute.xlu0 %866 }
 0x220   : > { %1244 = vrot.lane.b32.xlu1 %v2381_v10, %s2642_s24  ;;  %959 = vst.msk [vmem:[#allocation3 + $0x20] sm:$0xff] %vm954_vm4, %v867_v58 }
 0x221   : > { %1665 = vrot.lane.b32.xlu0 %v3599_v62, %s2644_s26 }
 0x222   : > { %v1676_v36 = vpop.permute.xlu1 %1675 }
 0x223   : > { %1751 = vst.msk [vmem:[#allocation3 + $0xa8] sm:$0xff] %vm1729_vm8, %v1676_v36  ;;  %v1644_v49 = vpop.permute.xlu0 %1643 }
 0x224   : > { %1440 = vrot.lane.b32.xlu1 %v3589_v23, %s2643_s25  ;;  %1735 = vst.msk [vmem:[#allocation3 + $0x28] sm:$0xff] %vm1729_vm8, %v1644_v49 }
 0x225   : > { %1858 = vrot.lane.b32.xlu0 %v3615_v16, %s2645_s27 }
 0x226   : > { %v1092_v29 = vpop.permute.xlu1 %1091 }
 0x227   : > { %1168 = vst.msk [vmem:[#allocation3 + $0xa0] sm:$0xff] %vm1147_vm5, %v1092_v29  ;;  %v1060_v18 = vpop.permute.xlu0 %1059 }
 0x228   : > { %1633 = vrot.lane.b32.xlu1 %v3605_v1, %s2644_s26  ;;  %1152 = vst.msk [vmem:[#allocation3 + $0x20] sm:$0xff] %vm1147_vm5, %v1060_v18 }
 0x22a   : > { %v1869_v23 = vpop.permute.xlu1 %1868 }
 0x22b   : > { %1944 = vst.msk [vmem:[#allocation3 + $0xa8] sm:$0xff] %vm1922_vm9, %v1869_v23  ;;  %v1837_v48 = vpop.permute.xlu0 %1836 }
 0x22c   : > { %1826 = vrot.lane.b32.xlu1 %v3624_v5, %s2645_s27  ;;  %1928 = vst.msk [vmem:[#allocation3 + $0x28] sm:$0xff] %vm1922_vm9, %v1837_v48 }
 0x22e   : > { %v1285_v57 = vpop.permute.xlu1 %1284 }
 0x22f   : > { %1361 = vst.msk [vmem:[#allocation3 + $0xa0] sm:$0xff] %vm1340_vm6, %v1285_v57  ;;  %v1481_v34 = vpop.permute.xlu0 %1480 }
 0x230   : > { %1557 = vst.msk [vmem:[#allocation3 + $0xa0] sm:$0xff] %vm1536_vm7, %v1481_v34 }
 0x232   : > { %v1253_v62 = vpop.permute.xlu1 %1252  ;;  %v1976_v41 = vld [vmem:[#allocation3 + $0xa8] sm:$0xff] }
 0x233   : > { %1345 = vst.msk [vmem:[#allocation3 + $0x20] sm:$0xff] %vm1340_vm6, %v1253_v62  ;;  %2566 = vmatprep.subr.msk.mxu0 %vm1988_vm10, %v1976_v41  ;;  %v1449_v1 = vpop.permute.xlu0 %1448  ;;  %v1960_v31 = vld [vmem:[#allocation3 + $0x28] sm:$0xff] }
 0x234   : > { %1541 = vst.msk [vmem:[#allocation3 + $0x20] sm:$0xff] %vm1536_vm7, %v1449_v1  ;;  %2567 = vmatpush3.xpose.msk.msra.mxu0 %vm1988_vm10, %v1960_v31 }
 0x236   : > { %v897_v20 = vpop.permute.xlu1 %896 }
 0x237   : > { %974 = vst.msk [vmem:[#allocation3 + $0x98] sm:$0xff] %vm954_vm4, %v897_v20  ;;  %v865_v12 = vpop.permute.xlu0 %864 }
 0x238   : > { %958 = vst.msk [vmem:[#allocation3 + $0x18] sm:$0xff] %vm954_vm4, %v865_v12 }
 0x23a   : > { %v1674_v16 = vpop.permute.xlu1 %1673 }
 0x23b   : > { %1750 = vst.msk [vmem:[#allocation3 + $0xa0] sm:$0xff] %vm1729_vm8, %v1674_v16  ;;  %v1642_v6 = vpop.permute.xlu0 %1641 }
 0x23c   : > { %1734 = vst.msk [vmem:[#allocation3 + $0x20] sm:$0xff] %vm1729_vm8, %v1642_v6 }
 0x23e   : > { %v1090_v25 = vpop.permute.xlu1 %1089 }
 0x23f   : > { %1167 = vst.msk [vmem:[#allocation3 + $0x98] sm:$0xff] %vm1147_vm5, %v1090_v25  ;;  %v1058_v56 = vpop.permute.xlu0 %1057 }
 0x240   : > { %1151 = vst.msk [vmem:[#allocation3 + $0x18] sm:$0xff] %vm1147_vm5, %v1058_v56 }
 0x242   : > { %v1867_v38 = vpop.permute.xlu1 %1866 }
 0x243   : > { %1943 = vst.msk [vmem:[#allocation3 + $0xa0] sm:$0xff] %vm1922_vm9, %v1867_v38  ;;  %v1835_v24 = vpop.permute.xlu0 %1834 }
 0x244   : > { %1927 = vst.msk [vmem:[#allocation3 + $0x20] sm:$0xff] %vm1922_vm9, %v1835_v24 }
 0x246   : > { %v1283_v5 = vpop.permute.xlu1 %1282 }
 0x247   : > { %1360 = vst.msk [vmem:[#allocation3 + $0x98] sm:$0xff] %vm1340_vm6, %v1283_v5  ;;  %v1479_v21 = vpop.permute.xlu0 %1478 }
 0x248   : > { %1556 = vst.msk [vmem:[#allocation3 + $0x98] sm:$0xff] %vm1536_vm7, %v1479_v21 }
 0x24a   : > { %v1251_v51 = vpop.permute.xlu1 %1250  ;;  %v1975_v50 = vld [vmem:[#allocation3 + $0xa0] sm:$0xff] }
 0x24b   : > { %1344 = vst.msk [vmem:[#allocation3 + $0x18] sm:$0xff] %vm1340_vm6, %v1251_v51  ;;  %2568 = vmatprep.subr.msk.mxu0 %vm1988_vm10, %v1975_v50  ;;  %v1447_v22 = vpop.permute.xlu0 %1446  ;;  %v1959_v14 = vld [vmem:[#allocation3 + $0x20] sm:$0xff] }
 0x24c   : > { %1540 = vst.msk [vmem:[#allocation3 + $0x18] sm:$0xff] %vm1536_vm7, %v1447_v22  ;;  %2569 = vmatpush3.xpose.msk.msra.mxu0 %vm1988_vm10, %v1959_v14 }
 0x24e   : > { %v895_v32 = vpop.permute.xlu1 %894 }
 0x24f   : > { %973 = vst.msk [vmem:[#allocation3 + $0x90] sm:$0xff] %vm954_vm4, %v895_v32  ;;  %v863_v47 = vpop.permute.xlu0 %862 }
 0x250   : > { %957 = vst.msk [vmem:[#allocation3 + $0x10] sm:$0xff] %vm954_vm4, %v863_v47 }
 0x252   : > { %v1672_v52 = vpop.permute.xlu1 %1671 }
 0x253   : > { %1749 = vst.msk [vmem:[#allocation3 + $0x98] sm:$0xff] %vm1729_vm8, %v1672_v52  ;;  %v1640_v7 = vpop.permute.xlu0 %1639 }
 0x254   : > { %1733 = vst.msk [vmem:[#allocation3 + $0x18] sm:$0xff] %vm1729_vm8, %v1640_v7 }
 0x256   : > { %v1088_v43 = vpop.permute.xlu1 %1087 }
 0x257   : > { %1166 = vst.msk [vmem:[#allocation3 + $0x90] sm:$0xff] %vm1147_vm5, %v1088_v43  ;;  %v1056_v0 = vpop.permute.xlu0 %1055 }
 0x258   : > { %1150 = vst.msk [vmem:[#allocation3 + $0x10] sm:$0xff] %vm1147_vm5, %v1056_v0 }
 0x25a   : > { %v1865_v15 = vpop.permute.xlu1 %1864 }
 0x25b   : > { %1942 = vst.msk [vmem:[#allocation3 + $0x98] sm:$0xff] %vm1922_vm9, %v1865_v15  ;;  %v1833_v35 = vpop.permute.xlu0 %1832 }
 0x25c   : > { %1926 = vst.msk [vmem:[#allocation3 + $0x18] sm:$0xff] %vm1922_vm9, %v1833_v35 }
 0x25e   : > { %v1281_v61 = vpop.permute.xlu1 %1280 }
 0x25f   : > { %1359 = vst.msk [vmem:[#allocation3 + $0x90] sm:$0xff] %vm1340_vm6, %v1281_v61  ;;  %v1477_v55 = vpop.permute.xlu0 %1476 }
 0x260   : > { %1555 = vst.msk [vmem:[#allocation3 + $0x90] sm:$0xff] %vm1536_vm7, %v1477_v55 }
 0x262   : > { %v1249_v11 = vpop.permute.xlu1 %1248  ;;  %v1974_v37 = vld [vmem:[#allocation3 + $0x98] sm:$0xff] }
 0x263   : > { %1343 = vst.msk [vmem:[#allocation3 + $0x10] sm:$0xff] %vm1340_vm6, %v1249_v11  ;;  %2570 = vmatprep.subr.msk.mxu0 %vm1988_vm10, %v1974_v37  ;;  %v1445_v53 = vpop.permute.xlu0 %1444  ;;  %v1958_v3 = vld [vmem:[#allocation3 + $0x18] sm:$0xff] }
 0x264   : > { %1539 = vst.msk [vmem:[#allocation3 + $0x10] sm:$0xff] %vm1536_vm7, %v1445_v53  ;;  %2571 = vmatpush3.xpose.msk.msra.mxu0 %vm1988_vm10, %v1958_v3 }
 0x266   : > { %v893_v28 = vpop.permute.xlu1 %892 }
 0x267   : > { %972 = vst.msk [vmem:[#allocation3 + $0x88] sm:$0xff] %vm954_vm4, %v893_v28  ;;  %v861_v17 = vpop.permute.xlu0 %860 }
 0x268   : > { %956 = vst.msk [vmem:[#allocation3 + $0x8] sm:$0xff] %vm954_vm4, %v861_v17 }
 0x26a   : > { %v1670_v27 = vpop.permute.xlu1 %1669 }
 0x26b   : > { %1748 = vst.msk [vmem:[#allocation3 + $0x90] sm:$0xff] %vm1729_vm8, %v1670_v27  ;;  %v1638_v33 = vpop.permute.xlu0 %1637 }
 0x26c   : > { %1732 = vst.msk [vmem:[#allocation3 + $0x10] sm:$0xff] %vm1729_vm8, %v1638_v33 }
 0x26e   : > { %v1086_v42 = vpop.permute.xlu1 %1085 }
 0x26f   : > { %1165 = vst.msk [vmem:[#allocation3 + $0x88] sm:$0xff] %vm1147_vm5, %v1086_v42  ;;  %v1054_v54 = vpop.permute.xlu0 %1053 }
 0x270   : > { %1149 = vst.msk [vmem:[#allocation3 + $0x8] sm:$0xff] %vm1147_vm5, %v1054_v54 }
 0x272   : > { %v1863_v40 = vpop.permute.xlu1 %1862 }
 0x273   : > { %1941 = vst.msk [vmem:[#allocation3 + $0x90] sm:$0xff] %vm1922_vm9, %v1863_v40  ;;  %v1831_v45 = vpop.permute.xlu0 %1830 }
 0x274   : > { %1925 = vst.msk [vmem:[#allocation3 + $0x10] sm:$0xff] %vm1922_vm9, %v1831_v45 }
 0x276   : > { %v1279_v63 = vpop.permute.xlu1 %1278 }
 0x277   : > { %1358 = vst.msk [vmem:[#allocation3 + $0x88] sm:$0xff] %vm1340_vm6, %v1279_v63  ;;  %v1475_v60 = vpop.permute.xlu0 %1474 }
 0x278   : > { %1554 = vst.msk [vmem:[#allocation3 + $0x88] sm:$0xff] %vm1536_vm7, %v1475_v60 }
 0x27a   : > { %v1247_v19 = vpop.permute.xlu1 %1246  ;;  %v1973_v2 = vld [vmem:[#allocation3 + $0x90] sm:$0xff] }
 0x27b   : > { %1342 = vst.msk [vmem:[#allocation3 + $0x8] sm:$0xff] %vm1340_vm6, %v1247_v19  ;;  %2572 = vmatprep.subr.msk.mxu0 %vm1988_vm10, %v1973_v2  ;;  %v1443_v59 = vpop.permute.xlu0 %1442  ;;  %v1957_v26 = vld [vmem:[#allocation3 + $0x10] sm:$0xff] }
 0x27c   : > { %1538 = vst.msk [vmem:[#allocation3 + $0x8] sm:$0xff] %vm1536_vm7, %v1443_v59  ;;  %2573 = vmatpush3.xpose.msk.msra.mxu0 %vm1988_vm10, %v1957_v26 }
 0x27e   : > { %v891_v46 = vpop.permute.xlu1 %890 }
 0x27f   : > { %971 = vst.msk [vmem:[#allocation3 + $0x80] sm:$0xff] %vm954_vm4, %v891_v46  ;;  %v859_v13 = vpop.permute.xlu0 %858 }
 0x280   : > { %955 = vst.msk [vmem:[#allocation3] sm:$0xff] %vm954_vm4, %v859_v13 }
 0x282   : > { %v1668_v39 = vpop.permute.xlu1 %1667 }
 0x283   : > { %1747 = vst.msk [vmem:[#allocation3 + $0x88] sm:$0xff] %vm1729_vm8, %v1668_v39  ;;  %v1636_v30 = vpop.permute.xlu0 %1635 }
 0x284   : > { %1731 = vst.msk [vmem:[#allocation3 + $0x8] sm:$0xff] %vm1729_vm8, %v1636_v30 }
 0x286   : > { %v1084_v9 = vpop.permute.xlu1 %1083 }
 0x287   : > { %1164 = vst.msk [vmem:[#allocation3 + $0x80] sm:$0xff] %vm1147_vm5, %v1084_v9  ;;  %v1052_v4 = vpop.permute.xlu0 %1051 }
 0x288   : > { %1148 = vst.msk [vmem:[#allocation3] sm:$0xff] %vm1147_vm5, %v1052_v4 }
 0x28a   : > { %v1861_v10 = vpop.permute.xlu1 %1860 }
 0x28b   : > { %1940 = vst.msk [vmem:[#allocation3 + $0x88] sm:$0xff] %vm1922_vm9, %v1861_v10  ;;  %v1829_v8 = vpop.permute.xlu0 %1828 }
 0x28c   : > { %1924 = vst.msk [vmem:[#allocation3 + $0x8] sm:$0xff] %vm1922_vm9, %v1829_v8 }
 0x28e   : > { %v1277_v58 = vpop.permute.xlu1 %1276 }
 0x28f   : > { %1357 = vst.msk [vmem:[#allocation3 + $0x80] sm:$0xff] %vm1340_vm6, %v1277_v58  ;;  %v1473_v36 = vpop.permute.xlu0 %1472 }
 0x290   : > { %1553 = vst.msk [vmem:[#allocation3 + $0x80] sm:$0xff] %vm1536_vm7, %v1473_v36 }
 0x292   : > { %v1245_v49 = vpop.permute.xlu1 %1244  ;;  %v1972_v29 = vld [vmem:[#allocation3 + $0x88] sm:$0xff] }
 0x293   : > { %1341 = vst.msk [vmem:[#allocation3] sm:$0xff] %vm1340_vm6, %v1245_v49  ;;  %2574 = vmatprep.subr.msk.mxu0 %vm1988_vm10, %v1972_v29  ;;  %v1666_v18 = vpop.permute.xlu0 %1665  ;;  %v1956_v23 = vld [vmem:[#allocation3 + $0x8] sm:$0xff] }
 0x294   : > { %1746 = vst.msk [vmem:[#allocation3 + $0x80] sm:$0xff] %vm1729_vm8, %v1666_v18  ;;  %2575 = vmatpush3.xpose.msk.msra.mxu0 %vm1988_vm10, %v1956_v23 }
 0x296   : > { %v1441_v48 = vpop.permute.xlu1 %1440 }
 0x297   : > { %1537 = vst.msk [vmem:[#allocation3] sm:$0xff] %vm1536_vm7, %v1441_v48  ;;  %v1859_v57 = vpop.permute.xlu0 %1858 }
 0x298   : > { %1939 = vst.msk [vmem:[#allocation3 + $0x80] sm:$0xff] %vm1922_vm9, %v1859_v57 }
 0x29a   : > { %v1634_v34 = vpop.permute.xlu1 %1633 }
 0x29b   : > { %1730 = vst.msk [vmem:[#allocation3] sm:$0xff] %vm1729_vm8, %v1634_v34 }
 0x29e   : > { %v1827_v62 = vpop.permute.xlu1 %1826 }
 0x29f   : > { %1923 = vst.msk [vmem:[#allocation3] sm:$0xff] %vm1922_vm9, %v1827_v62  ;;  %v1971_v41 = vld [vmem:[#allocation3 + $0x80] sm:$0xff] }
 0x2a0   : > { %2576 = vmatprep.subr.msk.mxu0 %vm1988_vm10, %v1971_v41 }
 0x2a6   : > { %v1955_v1 = vld [vmem:[#allocation3] sm:$0xff] }
 0x2a7   : > { %2577 = vmatpush3.xpose.msk.msra.mxu0 %vm1988_vm10, %v1955_v1 }
 0x2aa   : > { %2579 = vmatmul.mubr.msk.f32.vlgmr.msra.gmra.mxu0 %vm1988_vm10, %v3709_v44 }
 0x36a   : > { %v2154_v31 = vpop.f32.mrf.mxu0 }
 0x36b   : > { %2171 = vst [vmem:[%s204_s6] sm:$0xff] %v2154_v31  ;;  %v2164_v12 = vmul.f32 %v2154_v31, %v2154_v31 }
 0x36c   : > { %v2156_v20 = vpop.f32.mrf.mxu0 }
 0x36d   : > { %v2159_v16 = vadd.f32 %v2156_v20, %v2154_v31  ;;  %v2165_v6 = vmul.f32 %v2156_v20, %v2156_v20  ;;  %2172 = vst [vmem:[%s204_s6 + $0x8] sm:$0xff] %v2156_v20 }
 0x36f   : > { %v2166_v25 = vadd.f32 %v2165_v6, %v2164_v12  ;;  %2160 = vadd.xlane.f32.xlu0 %v2159_v16 }
 0x371   : > { %2167 = vadd.xlane.f32.xlu1 %v2166_v25 }
 0x3f8   : > { %v2161_v44 = vpop.xlane.xlu0 %2160 }
 0x3f9   : > { %2163 = vst.msk [vmem:[%s211_s10] sm:$0xff] %vm2162_vm11, %v2161_v44 }
 0x3fa   : > { %v2168_v56 = vpop.xlane.xlu1 %2167 }
 0x3fb   : > { %2170 = vst.msk [vmem:[%s211_s10] sm:$0xff] %vm2169_vm12, %v2168_v56 }
 0x3fc PF: > { %s14_s14 = sadd.s32 1, %s2635_s14   ;;  %s3811_s12 = smov %s2631_s13 }
 0x3fd   : > { %p11_p5 = scmp.ge.s32.totalorder %s14_s14, 4   ;;  %s3812_s13 = smov %s3814_s15 }
 0x3ff   :  { %13 = sbr.rel (!%p11_p5) target bundleno = 2 (0x2), region = 78 }

</bundles_post_ra>
